<compile_context>
chip_gen: v6e
topology: v6e:2x2x1
jax: 0.10.0
libtpu: 0.0.40
codegen_flags: <defaults>
</compile_context>

<pallas_src>
import math

import jax
import jax.numpy as jnp
from jax import lax
from jax.experimental import pallas as pl
from jax.experimental.pallas import tpu as pltpu

LN_EPS = 1e-5    # nn.LayerNorm default
GRN_EPS = 1e-6   # GRN epsilon from the PyTorch code


# ------------------------------ fused kernel -------------------------------
def _make_kernel(Cin, Cout, K, Lo):
    C4 = 4 * Cout
    inv_cl = 1.0 / float(Cout * Lo)
    bf16 = jnp.bfloat16
    f32 = jnp.float32

    def kernel(xcol_ref, wpack_ref, vpack_ref, lnpack_ref, rmat_ref, bmat_ref,
               out_ref):
        xcol = xcol_ref[...]            # (K*Cin, N)   bf16, rows ordered k*Cin+c
        wp = wpack_ref[...]             # (6, C4p, CKp) bf16 (pre-cast on host)
        vp = vpack_ref[...]             # (C4p, 128)    f32
        lnp = lnpack_ref[...]           # (4, Cout, N)  f32
        rmat = rmat_ref[...]            # (N, BB) bf16 0/1 : lane -> its sample
        bmat = bmat_ref[...]            # (BB, N) bf16 0/1 : sample -> its lanes

        # Weight slabs (zero-padded, already bf16).
        w1 = wp[0, :Cout, :Cin * K]
        w2 = wp[1, :C4, :Cout]
        w3 = wp[2, :Cout, :C4]
        ws = wp[3, :Cout, :Cin]
        w4 = wp[4, :C4, :Cout]
        w5 = wp[5, :Cout, :C4]

        b1 = vp[:Cout, 0:1]
        b2 = vp[:C4, 1:2]
        b3 = vp[:Cout, 2:3]
        bs = vp[:Cout, 3:4]
        b4 = vp[:C4, 4:5]
        b5 = vp[:Cout, 5:6]
        gg1 = vp[:C4, 6:7]
        gb1 = vp[:C4, 7:8]
        gg2 = vp[:C4, 8:9]
        gb2 = vp[:C4, 9:10]

        g_ln1, b_ln1, g_ln2, b_ln2 = lnp[0], lnp[1], lnp[2], lnp[3]

        # Segmented (per-sample) reductions over each group of Lo lanes, via
        # two skinny 0/1 bf16 matmuls (f32 accumulation on the MXU).
        def seg_reduce(rows):           # (r, N) f32 -> per-sample sums (r, BB)
            return jnp.dot(rows.astype(bf16), rmat, preferred_element_type=f32)

        def seg_bcast(per):             # (r, BB) f32 -> broadcast to lanes (r, N)
            return jnp.dot(per.astype(bf16), bmat, preferred_element_type=f32)

        def layernorm(h, g, b):         # per-sample LN over (Cout, Lo)
            mu = seg_bcast(seg_reduce(jnp.sum(h, axis=0, keepdims=True)) * inv_cl)
            d = h - mu
            var_s = seg_reduce(jnp.sum(d * d, axis=0, keepdims=True)) * inv_cl
            rstd = seg_bcast(lax.rsqrt(var_s + LN_EPS))
            return d * rstd * g + b

        def grn(h, gamma, beta):        # Gx = L2 norm over each sample's Lo lanes
            gx = jnp.sqrt(seg_reduce(h * h))                     # (C4, BB)
            nx = gx * pl.reciprocal(gx + GRN_EPS, approx=True)   # (C4, BB)
            return gamma * (h * seg_bcast(nx)) + beta + h

        def pdot(w_bf, h_f32):          # bf16 MXU operands, f32 accumulation
            return jnp.dot(w_bf, h_f32.astype(bf16), preferred_element_type=f32)

        # --- first branch: conv(k10,s4,p4) -> LN -> 1x1 -> GELU -> GRN -> 1x1 ---
        h = jnp.dot(w1, xcol, preferred_element_type=f32) + b1          # (Cout, N)
        h = layernorm(h, g_ln1, b_ln1)
        h = pdot(w2, h) + b2                                            # (C4, N)
        h = jax.nn.gelu(h, approximate=True)   # tanh GELU (EUP slot); ~1e-3 vs erf
        # nn.Dropout is identity at inference (eval mode); no RNG needed.
        h = grn(h, gg1, gb1)
        h = pdot(w3, h) + b3                                            # (Cout, N)

        # --- skip: MaxPool1d(4,4) == max over im2col taps k=4..7, then 1x1 conv ---
        mp = jnp.maximum(
            jnp.maximum(xcol[4 * Cin:5 * Cin], xcol[5 * Cin:6 * Cin]),
            jnp.maximum(xcol[6 * Cin:7 * Cin], xcol[7 * Cin:8 * Cin]))  # (Cin, N)
        res = jnp.dot(ws, mp, preferred_element_type=f32) + bs
        o1 = h + res

        # --- second branch ---
        h = layernorm(o1, g_ln2, b_ln2)
        h = pdot(w4, h) + b4
        h = jax.nn.gelu(h, approximate=True)
        h = grn(h, gg2, gb2)
        h = pdot(w5, h) + b5

        out_ref[...] = (h + o1).astype(out_ref.dtype)                   # (Cout, N)

    return kernel


# --------------------------- sizing heuristics ------------------------------
def _vmem_estimate(Cin, Cout, K, Lo, BB):
    """Rough per-step VMEM footprint (bytes), double-buffering included."""
    C4 = 4 * Cout
    N = BB * Lo
    C4p = -(-C4 // 8) * 8
    CKp = -(-max(Cin * K, C4) // 128) * 128
    est = 0
    est += 2 * (K * Cin) * N * 2                    # xcol block (bf16)
    est += 2 * Cout * N * 4                         # output block
    est += 2 * 4 * Cout * N * 4                     # LayerNorm affine slab
    est += 2 * 2 * max(N * 128, N * BB) * 2         # reduce+bcast mats (lane pad)
    est += 8 * C4 * N * 4                           # live f32 intermediates
    est += 2 * (6 * C4p * CKp * 2 + C4p * 128 * 4)  # weight + vector slabs
    return est


def _choose_block_batch(B, Cin, Cout, K, Lo, target_n=2048,
                        vmem_budget=24 * 2 ** 20):
    bb_min = 128 // math.gcd(Lo, 128)      # smallest lane-dense sample group
    m_cap = -(-B // bb_min)                # don't exceed the (padded) batch
    m = max(1, min(target_n // (bb_min * Lo), m_cap))
    while m > 1 and _vmem_estimate(Cin, Cout, K, Lo, bb_min * m) > vmem_budget:
        m -= 1

    def grid_of(mm):
        return -(-B // (bb_min * mm))

    # v7x has 2 TensorCores: prefer an even grid extent when it is cheap.
    if grid_of(m) > 1 and grid_of(m) % 2 == 1:
        for m2 in range(m, max(1, m // 2) - 1, -1):
            if grid_of(m2) % 2 == 0:
                m = m2
                break
    return bb_min * m


# ------------------------------ host wrapper -------------------------------
def residual_block_pallas(x, params, block_batch=None):
    B, Cin, L = x.shape
    Cout, Cin_w, K = params["w1"].shape
    # The maxpool-from-im2col trick and Lo = L // 4 are only valid for the
    # exact kernel_size=10 / stride=4 / padding=4 configuration of the module.
    assert Cin_w == Cin and K == 10 and L % 4 == 0
    C4 = 4 * Cout
    Lo = L // 4
    C4p = -(-C4 // 8) * 8
    CKp = -(-max(Cin * K, C4) // 128) * 128

    if block_batch is None:
        block_batch = _choose_block_batch(B, Cin, Cout, K, Lo)
    BB = block_batch
    assert (BB * Lo) % 128 == 0, "block_batch * (L//4) must be a multiple of 128"
    N = BB * Lo

    Bp = -(-B // BB) * BB                      # pad batch to a multiple of BB
    if Bp != B:
        x = jnp.pad(x, ((0, Bp - B), (0, 0), (0, 0)))

    # im2col for Conv1d(k=10, s=4, p=4); rows ordered (k, c) so taps k=4..7
    # form the MaxPool1d(4,4) window.  Batch folded into lanes: (K*Cin, Bp*Lo).
    # TODO(synk): for large L/Cin, build the taps in-kernel from a (Cin, L+8)
    # DMA (strided pl.ds reads) to remove the ~2.5x im2col read amplification.
    xpad = jnp.pad(x, ((0, 0), (0, 0), (4, 4)))
    taps = [xpad[:, :, k:k + 4 * (Lo - 1) + 1:4] for k in range(K)]   # (Bp,Cin,Lo)
    xcol = jnp.stack(taps, axis=1).reshape(Bp, K * Cin, Lo)
    xcol = jnp.transpose(xcol, (1, 0, 2)).reshape(K * Cin, Bp * Lo)
    xcol = xcol.astype(jnp.bfloat16)

    # --- consolidated parameter slabs (pre-cast bf16 weights, lane-dense) ---
    def padw(w):
        r, c = w.shape
        return jnp.pad(w, ((0, C4p - r), (0, CKp - c)))

    w1f = jnp.transpose(params["w1"], (0, 2, 1)).reshape(Cout, K * Cin)
    wpack = jnp.stack([padw(w1f), padw(params["w2"]), padw(params["w3"]),
                       padw(params["ws"]), padw(params["w4"]),
                       padw(params["w5"])]).astype(jnp.bfloat16)

    def padv(v):
        return jnp.pad(v[:, 0], (0, C4p - v.shape[0]))

    vcols = jnp.stack(
        [padv(params[k]) for k in
         ("b1", "b2", "b3", "bs", "b4", "b5",
          "grn_g1", "grn_b1", "grn_g2", "grn_b2")], axis=1)           # (C4p, 10)
    vpack = jnp.pad(vcols, ((0, 0), (0, 128 - vcols.shape[1]))).astype(jnp.float32)

    # LayerNorm affines replicated across the BB samples of one block; the
    # block is identical for every grid step so it is DMA'd only once.
    lnpack = jnp.stack([jnp.tile(params["g_ln1"], (1, BB)),
                        jnp.tile(params["b_ln1"], (1, BB)),
                        jnp.tile(params["g_ln2"], (1, BB)),
                        jnp.tile(params["b_ln2"], (1, BB))]).astype(jnp.float32)

    # Grid-invariant 0/1 segment reduce / broadcast matrices (exact in bf16).
    grp = jnp.arange(N, dtype=jnp.int32) // Lo
    samp = jnp.arange(BB, dtype=jnp.int32)
    rmat = (grp[:, None] == samp[None, :]).astype(jnp.bfloat16)       # (N, BB)
    bmat = (samp[:, None] == grp[None, :]).astype(jnp.bfloat16)       # (BB, N)

    kernel = _make_kernel(Cin, Cout, K, Lo)

    est = _vmem_estimate(Cin, Cout, K, Lo, BB)
    # Above the v5e 16 MiB scoped default, below v7x's 64 MiB physical VMEM.
    vmem_limit = int(min(max(2 * est, 32 * 2 ** 20), 48 * 2 ** 20))

    out2d = pl.pallas_call(
        kernel,
        out_shape=jax.ShapeDtypeStruct((Cout, Bp * Lo), x.dtype),
        grid_spec=pltpu.PrefetchScalarGridSpec(
            num_scalar_prefetch=0,
            grid=(Bp // BB,),
            in_specs=[
                pl.BlockSpec((K * Cin, N), lambda g: (0, g)),
                pl.BlockSpec(wpack.shape, lambda g: (0, 0, 0)),
                pl.BlockSpec(vpack.shape, lambda g: (0, 0)),
                pl.BlockSpec(lnpack.shape, lambda g: (0, 0, 0)),
                pl.BlockSpec(rmat.shape, lambda g: (0, 0)),
                pl.BlockSpec(bmat.shape, lambda g: (0, 0)),
            ],
            out_specs=pl.BlockSpec((Cout, N), lambda g: (0, g)),
        ),
        compiler_params=pltpu.CompilerParams(
            dimension_semantics=("parallel",),
            vmem_limit_bytes=vmem_limit),
    )(xcol, wpack, vpack, lnpack, rmat, bmat)

    out = out2d.reshape(Cout, Bp, Lo).transpose(1, 0, 2)              # (Bp,Cout,Lo)
    return out[:B]


# ------------------------- deterministic parameters ------------------------
def init_params(key, in_channels, out_channels, Lo):
    C4 = 4 * out_channels
    keys = jax.random.split(key, 20)

    def nrm(k, shape, scale=0.1):
        return (scale * jax.random.normal(k, shape)).astype(jnp.float32)

    return {
        "w1": nrm(keys[0], (out_channels, in_channels, 10)),
        "b1": nrm(keys[1], (out_channels, 1)),
        "g_ln1": 1.0 + nrm(keys[2], (out_channels, Lo)),
        "b_ln1": nrm(keys[3], (out_channels, Lo)),
        "w2": nrm(keys[4], (C4, out_channels)),
        "b2": nrm(keys[5], (C4, 1)),
        "grn_g1": nrm(keys[6], (C4, 1)),
        "grn_b1": nrm(keys[7], (C4, 1)),
        "w3": nrm(keys[8], (out_channels, C4)),
        "b3": nrm(keys[9], (out_channels, 1)),
        "ws": nrm(keys[10], (out_channels, in_channels)),
        "bs": nrm(keys[11], (out_channels, 1)),
        "g_ln2": 1.0 + nrm(keys[12], (out_channels, Lo)),
        "b_ln2": nrm(keys[13], (out_channels, Lo)),
        "w4": nrm(keys[14], (C4, out_channels)),
        "b4": nrm(keys[15], (C4, 1)),
        "grn_g2": nrm(keys[16], (C4, 1)),
        "grn_b2": nrm(keys[17], (C4, 1)),
        "w5": nrm(keys[18], (out_channels, C4)),
        "b5": nrm(keys[19], (out_channels, 1)),
    }


# ---------------------------- pure-JAX reference ----------------------------
def residual_block_reference(x, p):
    B, Cin, L = x.shape
    Lo = L // 4

    def ln(h, g, b):
        mu = h.mean(axis=(1, 2), keepdims=True)
        var = ((h - mu) ** 2).mean(axis=(1, 2), keepdims=True)
        return (h - mu) / jnp.sqrt(var + LN_EPS) * g[None] + b[None]

    def grn(h, gamma, beta):
        gx = jnp.sqrt(jnp.sum(h * h, axis=-1, keepdims=True))
        nx = gx / (gx + GRN_EPS)       # Gx.mean(dim=-1) over a size-1 dim == Gx
        return gamma[None] * (h * nx) + beta[None] + h

    def pw(w, b, h):
        return jnp.einsum("oc,bcl->bol", w, h) + b[None]

    h = lax.conv_general_dilated(
        x, p["w1"], window_strides=(4,), padding=[(4, 4)],
        dimension_numbers=("NCH", "OIH", "NCH")) + p["b1"][None]
    h = ln(h, p["g_ln1"], p["b_ln1"])
    h = pw(p["w2"], p["b2"], h)
    h = jax.nn.gelu(h, approximate=False)     # exact erf, like nn.GELU()
    h = grn(h, p["grn_g1"], p["grn_b1"])
    h = pw(p["w3"], p["b3"], h)

    mp = x.reshape(B, Cin, Lo, 4).max(axis=-1)
    res = pw(p["ws"], p["bs"], mp)
    o1 = h + res

    h = ln(o1, p["g_ln2"], p["b_ln2"])
    h = pw(p["w4"], p["b4"], h)
    h = jax.nn.gelu(h, approximate=False)
    h = grn(h, p["grn_g2"], p["grn_b2"])
    h = pw(p["w5"], p["b5"], h)
    return h + o1


# ----------------------------------- main -----------------------------------
if __name__ == "__main__":
    key = jax.random.PRNGKey(0)
    in_channels, out_channels = 4, 8
    original_len, ith_block = 256, 1
    reduced_len = original_len // 4 ** ith_block   # input length L = 64
    Lo = reduced_len // 4                          # output length = 16
    B = 16

    kx, kp = jax.random.split(key)
    x = jax.random.normal(kx, (B, in_channels, reduced_len), dtype=jnp.float32)
    params = init_params(kp, in_channels, out_channels, Lo)

    ref = residual_block_reference(x, params)

    # Default sizing: auto block_batch (single lane-dense block here, N=256).
    out = residual_block_pallas(x, params)
    out = jax.block_until_ready(out)
    assert out.shape == (B, out_channels, Lo), out.shape
    if not jnp.allclose(out, ref, rtol=2e-2, atol=2e-2):
        err = float(jnp.max(jnp.abs(out - ref)))
        raise AssertionError(
            f"Pallas kernel (default block_batch) mismatch, max abs err {err}")

    # Multi-step grid: exercises pipelining + constant-input DMA reuse.
    out2 = jax.block_until_ready(residual_block_pallas(x, params, block_batch=8))
    if not jnp.allclose(out2, ref, rtol=2e-2, atol=2e-2):
        err = float(jnp.max(jnp.abs(out2 - ref)))
        raise AssertionError(
            f"Pallas kernel (block_batch=8) mismatch, max abs err {err}")

    print("KERNEL_OK")
</pallas_src>

<mosaic_0001>
module attributes {stable_mosaic.version = 11 : i64} {
  func.func @kernel(%arg0: i32, %arg1: memref<40x256xbf16, #tpu.memory_space<vmem>>, %arg2: memref<6x32x128xbf16, #tpu.memory_space<vmem>>, %arg3: memref<32x128xf32, #tpu.memory_space<vmem>>, %arg4: memref<4x8x256xf32, #tpu.memory_space<vmem>>, %arg5: memref<256x16xbf16, #tpu.memory_space<vmem>>, %arg6: memref<16x256xbf16, #tpu.memory_space<vmem>>, %arg7: memref<8x256xf32, #tpu.memory_space<vmem>>) attributes {dimension_semantics = [#tpu.dimension_semantics<parallel>], iteration_bounds = array<i64: 1>, scalar_prefetch = 0 : i64, scratch_operands = 0 : i64, tpu.core_type = #tpu.core_type<tc>, window_params = [{transform_indices = @transform_0, window_bounds = array<i64: 40, 256>}, {pipeline_mode = #tpu.pipeline_mode<synchronous>, transform_indices = @transform_1, window_bounds = array<i64: 6, 32, 128>}, {pipeline_mode = #tpu.pipeline_mode<synchronous>, transform_indices = @transform_2, window_bounds = array<i64: 32, 128>}, {pipeline_mode = #tpu.pipeline_mode<synchronous>, transform_indices = @transform_3, window_bounds = array<i64: 4, 8, 256>}, {pipeline_mode = #tpu.pipeline_mode<synchronous>, transform_indices = @transform_4, window_bounds = array<i64: 256, 16>}, {pipeline_mode = #tpu.pipeline_mode<synchronous>, transform_indices = @transform_5, window_bounds = array<i64: 16, 256>}, {transform_indices = @transform_6, window_bounds = array<i64: 8, 256>}]} {
    %c0 = arith.constant 0 : index
    %c0_0 = arith.constant 0 : index
    %0 = vector.load %arg1[%c0, %c0_0] : memref<40x256xbf16, #tpu.memory_space<vmem>>, vector<40x256xbf16>
    %c0_1 = arith.constant 0 : index
    %c0_2 = arith.constant 0 : index
    %c0_3 = arith.constant 0 : index
    %1 = vector.load %arg2[%c0_1, %c0_2, %c0_3] : memref<6x32x128xbf16, #tpu.memory_space<vmem>>, vector<6x32x128xbf16>
    %c0_4 = arith.constant 0 : index
    %c0_5 = arith.constant 0 : index
    %2 = vector.load %arg3[%c0_4, %c0_5] : memref<32x128xf32, #tpu.memory_space<vmem>>, vector<32x128xf32>
    %c0_6 = arith.constant 0 : index
    %c0_7 = arith.constant 0 : index
    %c0_8 = arith.constant 0 : index
    %3 = vector.load %arg4[%c0_6, %c0_7, %c0_8] : memref<4x8x256xf32, #tpu.memory_space<vmem>>, vector<4x8x256xf32>
    %c0_9 = arith.constant 0 : index
    %c0_10 = arith.constant 0 : index
    %4 = vector.load %arg5[%c0_9, %c0_10] : memref<256x16xbf16, #tpu.memory_space<vmem>>, vector<256x16xbf16>
    %c0_11 = arith.constant 0 : index
    %c0_12 = arith.constant 0 : index
    %5 = vector.load %arg6[%c0_11, %c0_12] : memref<16x256xbf16, #tpu.memory_space<vmem>>, vector<16x256xbf16>
    %6 = vector.extract_strided_slice %1 {offsets = [0, 0, 0], sizes = [1, 8, 40], strides = [1, 1, 1]} : vector<6x32x128xbf16> to vector<1x8x40xbf16>
    %7 = vector.shape_cast %6 : vector<1x8x40xbf16> to vector<8x40xbf16>
    %8 = vector.extract_strided_slice %1 {offsets = [1, 0, 0], sizes = [1, 32, 8], strides = [1, 1, 1]} : vector<6x32x128xbf16> to vector<1x32x8xbf16>
    %9 = vector.shape_cast %8 : vector<1x32x8xbf16> to vector<32x8xbf16>
    %10 = vector.extract_strided_slice %1 {offsets = [2, 0, 0], sizes = [1, 8, 32], strides = [1, 1, 1]} : vector<6x32x128xbf16> to vector<1x8x32xbf16>
    %11 = vector.shape_cast %10 : vector<1x8x32xbf16> to vector<8x32xbf16>
    %12 = vector.extract_strided_slice %1 {offsets = [3, 0, 0], sizes = [1, 8, 4], strides = [1, 1, 1]} : vector<6x32x128xbf16> to vector<1x8x4xbf16>
    %13 = vector.shape_cast %12 : vector<1x8x4xbf16> to vector<8x4xbf16>
    %14 = vector.extract_strided_slice %1 {offsets = [4, 0, 0], sizes = [1, 32, 8], strides = [1, 1, 1]} : vector<6x32x128xbf16> to vector<1x32x8xbf16>
    %15 = vector.shape_cast %14 : vector<1x32x8xbf16> to vector<32x8xbf16>
    %16 = vector.extract_strided_slice %1 {offsets = [5, 0, 0], sizes = [1, 8, 32], strides = [1, 1, 1]} : vector<6x32x128xbf16> to vector<1x8x32xbf16>
    %17 = vector.shape_cast %16 : vector<1x8x32xbf16> to vector<8x32xbf16>
    %18 = vector.extract_strided_slice %2 {offsets = [0, 0], sizes = [8, 1], strides = [1, 1]} : vector<32x128xf32> to vector<8x1xf32>
    %19 = vector.extract_strided_slice %2 {offsets = [0, 1], sizes = [32, 1], strides = [1, 1]} : vector<32x128xf32> to vector<32x1xf32>
    %20 = vector.extract_strided_slice %2 {offsets = [0, 2], sizes = [8, 1], strides = [1, 1]} : vector<32x128xf32> to vector<8x1xf32>
    %21 = vector.extract_strided_slice %2 {offsets = [0, 3], sizes = [8, 1], strides = [1, 1]} : vector<32x128xf32> to vector<8x1xf32>
    %22 = vector.extract_strided_slice %2 {offsets = [0, 4], sizes = [32, 1], strides = [1, 1]} : vector<32x128xf32> to vector<32x1xf32>
    %23 = vector.extract_strided_slice %2 {offsets = [0, 5], sizes = [8, 1], strides = [1, 1]} : vector<32x128xf32> to vector<8x1xf32>
    %24 = vector.extract_strided_slice %2 {offsets = [0, 6], sizes = [32, 1], strides = [1, 1]} : vector<32x128xf32> to vector<32x1xf32>
    %25 = vector.extract_strided_slice %2 {offsets = [0, 7], sizes = [32, 1], strides = [1, 1]} : vector<32x128xf32> to vector<32x1xf32>
    %26 = vector.extract_strided_slice %2 {offsets = [0, 8], sizes = [32, 1], strides = [1, 1]} : vector<32x128xf32> to vector<32x1xf32>
    %27 = vector.extract_strided_slice %2 {offsets = [0, 9], sizes = [32, 1], strides = [1, 1]} : vector<32x128xf32> to vector<32x1xf32>
    %28 = vector.extract_strided_slice %3 {offsets = [0, 0, 0], sizes = [1, 8, 256], strides = [1, 1, 1]} : vector<4x8x256xf32> to vector<1x8x256xf32>
    %29 = vector.shape_cast %28 : vector<1x8x256xf32> to vector<8x256xf32>
    %30 = vector.extract_strided_slice %3 {offsets = [1, 0, 0], sizes = [1, 8, 256], strides = [1, 1, 1]} : vector<4x8x256xf32> to vector<1x8x256xf32>
    %31 = vector.shape_cast %30 : vector<1x8x256xf32> to vector<8x256xf32>
    %32 = vector.extract_strided_slice %3 {offsets = [2, 0, 0], sizes = [1, 8, 256], strides = [1, 1, 1]} : vector<4x8x256xf32> to vector<1x8x256xf32>
    %33 = vector.shape_cast %32 : vector<1x8x256xf32> to vector<8x256xf32>
    %34 = vector.extract_strided_slice %3 {offsets = [3, 0, 0], sizes = [1, 8, 256], strides = [1, 1, 1]} : vector<4x8x256xf32> to vector<1x8x256xf32>
    %35 = vector.shape_cast %34 : vector<1x8x256xf32> to vector<8x256xf32>
    %cst = arith.constant dense<0.000000e+00> : vector<8x256xf32>
    %36 = tpu.matmul %7, %0, %cst {dimension_numbers = #tpu.dot_dimension_numbers<[1], [0], [0], [1], [0, 0, 1, 1], [], []>} : vector<8x40xbf16>, vector<40x256xbf16>, vector<8x256xf32> -> vector<8x256xf32>
    %37 = vector.broadcast %18 : vector<8x1xf32> to vector<8x256xf32>
    %38 = arith.addf %36, %37 : vector<8x256xf32>
    %cst_13 = arith.constant dense<0.000000e+00> : vector<256xf32>
    %39 = vector.multi_reduction <add>, %38, %cst_13 [0] : vector<8x256xf32> to vector<256xf32>
    %40 = vector.shape_cast %39 : vector<256xf32> to vector<1x256xf32>
    %41 = arith.truncf %40 : vector<1x256xf32> to vector<1x256xbf16>
    %cst_14 = arith.constant dense<0.000000e+00> : vector<1x16xf32>
    %42 = tpu.matmul %41, %4, %cst_14 {dimension_numbers = #tpu.dot_dimension_numbers<[1], [0], [0], [1], [0, 0, 1, 1], [], []>} : vector<1x256xbf16>, vector<256x16xbf16>, vector<1x16xf32> -> vector<1x16xf32>
    %cst_15 = arith.constant 7.812500e-03 : f32
    %43 = vector.broadcast %cst_15 : f32 to vector<1x16xf32>
    %44 = arith.mulf %42, %43 : vector<1x16xf32>
    %45 = arith.truncf %44 : vector<1x16xf32> to vector<1x16xbf16>
    %cst_16 = arith.constant dense<0.000000e+00> : vector<1x256xf32>
    %46 = tpu.matmul %45, %5, %cst_16 {dimension_numbers = #tpu.dot_dimension_numbers<[1], [0], [0], [1], [0, 0, 1, 1], [], []>} : vector<1x16xbf16>, vector<16x256xbf16>, vector<1x256xf32> -> vector<1x256xf32>
    %47 = vector.broadcast %46 : vector<1x256xf32> to vector<8x256xf32>
    %48 = arith.subf %38, %47 : vector<8x256xf32>
    %49 = arith.mulf %48, %48 : vector<8x256xf32>
    %cst_17 = arith.constant dense<0.000000e+00> : vector<256xf32>
    %50 = vector.multi_reduction <add>, %49, %cst_17 [0] : vector<8x256xf32> to vector<256xf32>
    %51 = vector.shape_cast %50 : vector<256xf32> to vector<1x256xf32>
    %52 = arith.truncf %51 : vector<1x256xf32> to vector<1x256xbf16>
    %cst_18 = arith.constant dense<0.000000e+00> : vector<1x16xf32>
    %53 = tpu.matmul %52, %4, %cst_18 {dimension_numbers = #tpu.dot_dimension_numbers<[1], [0], [0], [1], [0, 0, 1, 1], [], []>} : vector<1x256xbf16>, vector<256x16xbf16>, vector<1x16xf32> -> vector<1x16xf32>
    %cst_19 = arith.constant 7.812500e-03 : f32
    %54 = vector.broadcast %cst_19 : f32 to vector<1x16xf32>
    %55 = arith.mulf %53, %54 : vector<1x16xf32>
    %cst_20 = arith.constant 9.99999974E-6 : f32
    %56 = vector.broadcast %cst_20 : f32 to vector<1x16xf32>
    %57 = arith.addf %55, %56 : vector<1x16xf32>
    %58 = math.rsqrt %57 : vector<1x16xf32>
    %59 = arith.truncf %58 : vector<1x16xf32> to vector<1x16xbf16>
    %cst_21 = arith.constant dense<0.000000e+00> : vector<1x256xf32>
    %60 = tpu.matmul %59, %5, %cst_21 {dimension_numbers = #tpu.dot_dimension_numbers<[1], [0], [0], [1], [0, 0, 1, 1], [], []>} : vector<1x16xbf16>, vector<16x256xbf16>, vector<1x256xf32> -> vector<1x256xf32>
    %61 = vector.broadcast %60 : vector<1x256xf32> to vector<8x256xf32>
    %62 = arith.mulf %48, %61 : vector<8x256xf32>
    %63 = arith.mulf %62, %29 : vector<8x256xf32>
    %64 = arith.addf %63, %31 : vector<8x256xf32>
    %65 = arith.truncf %64 : vector<8x256xf32> to vector<8x256xbf16>
    %cst_22 = arith.constant dense<0.000000e+00> : vector<32x256xf32>
    %66 = tpu.matmul %9, %65, %cst_22 {dimension_numbers = #tpu.dot_dimension_numbers<[1], [0], [0], [1], [0, 0, 1, 1], [], []>} : vector<32x8xbf16>, vector<8x256xbf16>, vector<32x256xf32> -> vector<32x256xf32>
    %67 = vector.broadcast %19 : vector<32x1xf32> to vector<32x256xf32>
    %68 = arith.addf %66, %67 : vector<32x256xf32>
    %69 = arith.mulf %68, %68 : vector<32x256xf32>
    %70 = arith.mulf %68, %69 : vector<32x256xf32>
    %cst_23 = arith.constant 4.471500e-02 : f32
    %71 = vector.broadcast %cst_23 : f32 to vector<32x256xf32>
    %72 = arith.mulf %71, %70 : vector<32x256xf32>
    %73 = arith.addf %68, %72 : vector<32x256xf32>
    %cst_24 = arith.constant 0.797884583 : f32
    %74 = vector.broadcast %cst_24 : f32 to vector<32x256xf32>
    %75 = arith.mulf %74, %73 : vector<32x256xf32>
    %76 = math.tanh %75 : vector<32x256xf32>
    %cst_25 = arith.constant 1.000000e+00 : f32
    %77 = vector.broadcast %cst_25 : f32 to vector<32x256xf32>
    %78 = arith.addf %77, %76 : vector<32x256xf32>
    %cst_26 = arith.constant 5.000000e-01 : f32
    %79 = vector.broadcast %cst_26 : f32 to vector<32x256xf32>
    %80 = arith.mulf %79, %78 : vector<32x256xf32>
    %81 = arith.mulf %68, %80 : vector<32x256xf32>
    %82 = arith.mulf %81, %81 : vector<32x256xf32>
    %83 = arith.truncf %82 : vector<32x256xf32> to vector<32x256xbf16>
    %cst_27 = arith.constant dense<0.000000e+00> : vector<32x16xf32>
    %84 = tpu.matmul %83, %4, %cst_27 {dimension_numbers = #tpu.dot_dimension_numbers<[1], [0], [0], [1], [0, 0, 1, 1], [], []>} : vector<32x256xbf16>, vector<256x16xbf16>, vector<32x16xf32> -> vector<32x16xf32>
    %85 = math.sqrt %84 : vector<32x16xf32>
    %cst_28 = arith.constant 9.99999997E-7 : f32
    %86 = vector.broadcast %cst_28 : f32 to vector<32x16xf32>
    %87 = arith.addf %85, %86 : vector<32x16xf32>
    %88 = tpu.reciprocal %87 {approx = true} : vector<32x16xf32> -> vector<32x16xf32>
    %89 = arith.mulf %85, %88 : vector<32x16xf32>
    %90 = arith.truncf %89 : vector<32x16xf32> to vector<32x16xbf16>
    %cst_29 = arith.constant dense<0.000000e+00> : vector<32x256xf32>
    %91 = tpu.matmul %90, %5, %cst_29 {dimension_numbers = #tpu.dot_dimension_numbers<[1], [0], [0], [1], [0, 0, 1, 1], [], []>} : vector<32x16xbf16>, vector<16x256xbf16>, vector<32x256xf32> -> vector<32x256xf32>
    %92 = arith.mulf %81, %91 : vector<32x256xf32>
    %93 = vector.broadcast %24 : vector<32x1xf32> to vector<32x256xf32>
    %94 = arith.mulf %93, %92 : vector<32x256xf32>
    %95 = vector.broadcast %25 : vector<32x1xf32> to vector<32x256xf32>
    %96 = arith.addf %94, %95 : vector<32x256xf32>
    %97 = arith.addf %96, %81 : vector<32x256xf32>
    %98 = arith.truncf %97 : vector<32x256xf32> to vector<32x256xbf16>
    %cst_30 = arith.constant dense<0.000000e+00> : vector<8x256xf32>
    %99 = tpu.matmul %11, %98, %cst_30 {dimension_numbers = #tpu.dot_dimension_numbers<[1], [0], [0], [1], [0, 0, 1, 1], [], []>} : vector<8x32xbf16>, vector<32x256xbf16>, vector<8x256xf32> -> vector<8x256xf32>
    %100 = vector.broadcast %20 : vector<8x1xf32> to vector<8x256xf32>
    %101 = arith.addf %99, %100 : vector<8x256xf32>
    %102 = vector.extract_strided_slice %0 {offsets = [16, 0], sizes = [4, 256], strides = [1, 1]} : vector<40x256xbf16> to vector<4x256xbf16>
    %103 = vector.extract_strided_slice %0 {offsets = [20, 0], sizes = [4, 256], strides = [1, 1]} : vector<40x256xbf16> to vector<4x256xbf16>
    %104 = arith.maximumf %102, %103 : vector<4x256xbf16>
    %105 = vector.extract_strided_slice %0 {offsets = [24, 0], sizes = [4, 256], strides = [1, 1]} : vector<40x256xbf16> to vector<4x256xbf16>
    %106 = vector.extract_strided_slice %0 {offsets = [28, 0], sizes = [4, 256], strides = [1, 1]} : vector<40x256xbf16> to vector<4x256xbf16>
    %107 = arith.maximumf %105, %106 : vector<4x256xbf16>
    %108 = arith.maximumf %104, %107 : vector<4x256xbf16>
    %cst_31 = arith.constant dense<0.000000e+00> : vector<8x256xf32>
    %109 = tpu.matmul %13, %108, %cst_31 {dimension_numbers = #tpu.dot_dimension_numbers<[1], [0], [0], [1], [0, 0, 1, 1], [], []>} : vector<8x4xbf16>, vector<4x256xbf16>, vector<8x256xf32> -> vector<8x256xf32>
    %110 = vector.broadcast %21 : vector<8x1xf32> to vector<8x256xf32>
    %111 = arith.addf %109, %110 : vector<8x256xf32>
    %112 = arith.addf %101, %111 : vector<8x256xf32>
    %cst_32 = arith.constant dense<0.000000e+00> : vector<256xf32>
    %113 = vector.multi_reduction <add>, %112, %cst_32 [0] : vector<8x256xf32> to vector<256xf32>
    %114 = vector.shape_cast %113 : vector<256xf32> to vector<1x256xf32>
    %115 = arith.truncf %114 : vector<1x256xf32> to vector<1x256xbf16>
    %cst_33 = arith.constant dense<0.000000e+00> : vector<1x16xf32>
    %116 = tpu.matmul %115, %4, %cst_33 {dimension_numbers = #tpu.dot_dimension_numbers<[1], [0], [0], [1], [0, 0, 1, 1], [], []>} : vector<1x256xbf16>, vector<256x16xbf16>, vector<1x16xf32> -> vector<1x16xf32>
    %cst_34 = arith.constant 7.812500e-03 : f32
    %117 = vector.broadcast %cst_34 : f32 to vector<1x16xf32>
    %118 = arith.mulf %116, %117 : vector<1x16xf32>
    %119 = arith.truncf %118 : vector<1x16xf32> to vector<1x16xbf16>
    %cst_35 = arith.constant dense<0.000000e+00> : vector<1x256xf32>
    %120 = tpu.matmul %119, %5, %cst_35 {dimension_numbers = #tpu.dot_dimension_numbers<[1], [0], [0], [1], [0, 0, 1, 1], [], []>} : vector<1x16xbf16>, vector<16x256xbf16>, vector<1x256xf32> -> vector<1x256xf32>
    %121 = vector.broadcast %120 : vector<1x256xf32> to vector<8x256xf32>
    %122 = arith.subf %112, %121 : vector<8x256xf32>
    %123 = arith.mulf %122, %122 : vector<8x256xf32>
    %cst_36 = arith.constant dense<0.000000e+00> : vector<256xf32>
    %124 = vector.multi_reduction <add>, %123, %cst_36 [0] : vector<8x256xf32> to vector<256xf32>
    %125 = vector.shape_cast %124 : vector<256xf32> to vector<1x256xf32>
    %126 = arith.truncf %125 : vector<1x256xf32> to vector<1x256xbf16>
    %cst_37 = arith.constant dense<0.000000e+00> : vector<1x16xf32>
    %127 = tpu.matmul %126, %4, %cst_37 {dimension_numbers = #tpu.dot_dimension_numbers<[1], [0], [0], [1], [0, 0, 1, 1], [], []>} : vector<1x256xbf16>, vector<256x16xbf16>, vector<1x16xf32> -> vector<1x16xf32>
    %cst_38 = arith.constant 7.812500e-03 : f32
    %128 = vector.broadcast %cst_38 : f32 to vector<1x16xf32>
    %129 = arith.mulf %127, %128 : vector<1x16xf32>
    %cst_39 = arith.constant 9.99999974E-6 : f32
    %130 = vector.broadcast %cst_39 : f32 to vector<1x16xf32>
    %131 = arith.addf %129, %130 : vector<1x16xf32>
    %132 = math.rsqrt %131 : vector<1x16xf32>
    %133 = arith.truncf %132 : vector<1x16xf32> to vector<1x16xbf16>
    %cst_40 = arith.constant dense<0.000000e+00> : vector<1x256xf32>
    %134 = tpu.matmul %133, %5, %cst_40 {dimension_numbers = #tpu.dot_dimension_numbers<[1], [0], [0], [1], [0, 0, 1, 1], [], []>} : vector<1x16xbf16>, vector<16x256xbf16>, vector<1x256xf32> -> vector<1x256xf32>
    %135 = vector.broadcast %134 : vector<1x256xf32> to vector<8x256xf32>
    %136 = arith.mulf %122, %135 : vector<8x256xf32>
    %137 = arith.mulf %136, %33 : vector<8x256xf32>
    %138 = arith.addf %137, %35 : vector<8x256xf32>
    %139 = arith.truncf %138 : vector<8x256xf32> to vector<8x256xbf16>
    %cst_41 = arith.constant dense<0.000000e+00> : vector<32x256xf32>
    %140 = tpu.matmul %15, %139, %cst_41 {dimension_numbers = #tpu.dot_dimension_numbers<[1], [0], [0], [1], [0, 0, 1, 1], [], []>} : vector<32x8xbf16>, vector<8x256xbf16>, vector<32x256xf32> -> vector<32x256xf32>
    %141 = vector.broadcast %22 : vector<32x1xf32> to vector<32x256xf32>
    %142 = arith.addf %140, %141 : vector<32x256xf32>
    %143 = arith.mulf %142, %142 : vector<32x256xf32>
    %144 = arith.mulf %142, %143 : vector<32x256xf32>
    %cst_42 = arith.constant 4.471500e-02 : f32
    %145 = vector.broadcast %cst_42 : f32 to vector<32x256xf32>
    %146 = arith.mulf %145, %144 : vector<32x256xf32>
    %147 = arith.addf %142, %146 : vector<32x256xf32>
    %cst_43 = arith.constant 0.797884583 : f32
    %148 = vector.broadcast %cst_43 : f32 to vector<32x256xf32>
    %149 = arith.mulf %148, %147 : vector<32x256xf32>
    %150 = math.tanh %149 : vector<32x256xf32>
    %cst_44 = arith.constant 1.000000e+00 : f32
    %151 = vector.broadcast %cst_44 : f32 to vector<32x256xf32>
    %152 = arith.addf %151, %150 : vector<32x256xf32>
    %cst_45 = arith.constant 5.000000e-01 : f32
    %153 = vector.broadcast %cst_45 : f32 to vector<32x256xf32>
    %154 = arith.mulf %153, %152 : vector<32x256xf32>
    %155 = arith.mulf %142, %154 : vector<32x256xf32>
    %156 = arith.mulf %155, %155 : vector<32x256xf32>
    %157 = arith.truncf %156 : vector<32x256xf32> to vector<32x256xbf16>
    %cst_46 = arith.constant dense<0.000000e+00> : vector<32x16xf32>
    %158 = tpu.matmul %157, %4, %cst_46 {dimension_numbers = #tpu.dot_dimension_numbers<[1], [0], [0], [1], [0, 0, 1, 1], [], []>} : vector<32x256xbf16>, vector<256x16xbf16>, vector<32x16xf32> -> vector<32x16xf32>
    %159 = math.sqrt %158 : vector<32x16xf32>
    %cst_47 = arith.constant 9.99999997E-7 : f32
    %160 = vector.broadcast %cst_47 : f32 to vector<32x16xf32>
    %161 = arith.addf %159, %160 : vector<32x16xf32>
    %162 = tpu.reciprocal %161 {approx = true} : vector<32x16xf32> -> vector<32x16xf32>
    %163 = arith.mulf %159, %162 : vector<32x16xf32>
    %164 = arith.truncf %163 : vector<32x16xf32> to vector<32x16xbf16>
    %cst_48 = arith.constant dense<0.000000e+00> : vector<32x256xf32>
    %165 = tpu.matmul %164, %5, %cst_48 {dimension_numbers = #tpu.dot_dimension_numbers<[1], [0], [0], [1], [0, 0, 1, 1], [], []>} : vector<32x16xbf16>, vector<16x256xbf16>, vector<32x256xf32> -> vector<32x256xf32>
    %166 = arith.mulf %155, %165 : vector<32x256xf32>
    %167 = vector.broadcast %26 : vector<32x1xf32> to vector<32x256xf32>
    %168 = arith.mulf %167, %166 : vector<32x256xf32>
    %169 = vector.broadcast %27 : vector<32x1xf32> to vector<32x256xf32>
    %170 = arith.addf %168, %169 : vector<32x256xf32>
    %171 = arith.addf %170, %155 : vector<32x256xf32>
    %172 = arith.truncf %171 : vector<32x256xf32> to vector<32x256xbf16>
    %cst_49 = arith.constant dense<0.000000e+00> : vector<8x256xf32>
    %173 = tpu.matmul %17, %172, %cst_49 {dimension_numbers = #tpu.dot_dimension_numbers<[1], [0], [0], [1], [0, 0, 1, 1], [], []>} : vector<8x32xbf16>, vector<32x256xbf16>, vector<8x256xf32> -> vector<8x256xf32>
    %174 = vector.broadcast %23 : vector<8x1xf32> to vector<8x256xf32>
    %175 = arith.addf %173, %174 : vector<8x256xf32>
    %176 = arith.addf %175, %112 : vector<8x256xf32>
    %c0_50 = arith.constant 0 : index
    %c0_51 = arith.constant 0 : index
    %177 = vector.load %arg7[%c0_50, %c0_51] : memref<8x256xf32, #tpu.memory_space<vmem>>, vector<8x256xf32>
    tpu.vector_store %arg7[%c0_50, %c0_51], %176 {strides = array<i32>} : memref<8x256xf32, #tpu.memory_space<vmem>>, vector<8x256xf32>,
    return
  }
  func.func @transform_0(%arg0: i32) -> (i32, i32) {
    %c0_i32 = arith.constant 0 : i32
    %c0_i32_0 = arith.constant 0 : i32
    return %c0_i32, %arg0 : i32, i32
  }
  func.func @transform_1(%arg0: i32) -> (i32, i32, i32) {
    %c0_i32 = arith.constant 0 : i32
    %c0_i32_0 = arith.constant 0 : i32
    %c0_i32_1 = arith.constant 0 : i32
    %c0_i32_2 = arith.constant 0 : i32
    return %c0_i32, %c0_i32_0, %c0_i32_1 : i32, i32, i32
  }
  func.func @transform_2(%arg0: i32) -> (i32, i32) {
    %c0_i32 = arith.constant 0 : i32
    %c0_i32_0 = arith.constant 0 : i32
    %c0_i32_1 = arith.constant 0 : i32
    return %c0_i32, %c0_i32_0 : i32, i32
  }
  func.func @transform_3(%arg0: i32) -> (i32, i32, i32) {
    %c0_i32 = arith.constant 0 : i32
    %c0_i32_0 = arith.constant 0 : i32
    %c0_i32_1 = arith.constant 0 : i32
    %c0_i32_2 = arith.constant 0 : i32
    return %c0_i32, %c0_i32_0, %c0_i32_1 : i32, i32, i32
  }
  func.func @transform_4(%arg0: i32) -> (i32, i32) {
    %c0_i32 = arith.constant 0 : i32
    %c0_i32_0 = arith.constant 0 : i32
    %c0_i32_1 = arith.constant 0 : i32
    return %c0_i32, %c0_i32_0 : i32, i32
  }
  func.func @transform_5(%arg0: i32) -> (i32, i32) {
    %c0_i32 = arith.constant 0 : i32
    %c0_i32_0 = arith.constant 0 : i32
    %c0_i32_1 = arith.constant 0 : i32
    return %c0_i32, %c0_i32_0 : i32, i32
  }
  func.func @transform_6(%arg0: i32) -> (i32, i32) {
    %c0_i32 = arith.constant 0 : i32
    %c0_i32_0 = arith.constant 0 : i32
    return %c0_i32, %arg0 : i32, i32
  }
}

</mosaic_0001>

<bundles_post_ra>
// kernel: tpu_custom_call.1
= control target key start
LH: loop header
LB: loop body
LE: loop exit
PB: predicated region body
PF: predicated region fallthrough
CT: control target
= control target key end

     0   :  { %11 = vsyncpa [#allocation3], 0  ;;  %s2808_s0 = inlined_call_operand.vmem [shape: bf16[40,256], index: 0, kind: input, shape index: {}]   ;;  %s2809_s1 = inlined_call_operand.vmem [shape: bf16[6,32,128], index: 1, kind: input, shape index: {}]   ;;  %s2810_s2 = inlined_call_operand.hbm [shape: f32[32,128], index: 2, kind: input, shape index: {}]   ;;  %s2811_s3 = inlined_call_operand.hbm [shape: f32[4,8,256], index: 3, kind: input, shape index: {}]   ;;  %s2812_s4 = inlined_call_operand.vmem [shape: bf16[256,16], index: 4, kind: input, shape index: {}]   ;;  %s2813_s5 = inlined_call_operand.vmem [shape: bf16[16,256], index: 5, kind: input, shape index: {}]   ;;  %s2814_s6 = inlined_call_operand.hbm [shape: f32[8,256], index: 6, kind: output, shape index: {}]  }
   0x1   :  { %12 = vsyncpa [#allocation6], 0 }
   0x2   :  { %13 = vsyncpa [#allocation4], 0  ;;  %s2163_s21 = smov [#allocation2]  }
   0x3   :  { %s23_s22 = sshll.u32 %s2163_s21, 4  ;;  %s24_s22 = int_to_ptr.vmem [resolvable:$true] %s23_s22 }
   0x4   :  { %s2105_s23 = scalar_lea.vmem %s24_s22, 512  ;;  %p2110_p1 = scmp.lt.s32.totalorder %s24_s22, %s24_s22 }
   0x5   :  { %p2106_p0 = scmp.ne.s32.totalorder %s24_s22, %s2105_s23  ;;  %p2111_p2 = scmp.lt.s32.totalorder %s2105_s23, %s2105_s23 }
   0x7   :  { %p2112_p3 = por %p2111_p2, %p2110_p1 }
   0x9   :  { %p2113_p4 = pnand %p2112_p3, %p2106_p0 }
   0xb   :  { %2116 = shalt.err (!%p2113_p4)
}
   0xc   :  { %s2164_s24 = smov 128   ;;  %s2165_s25 = smov 8  }
   0xd   :  { %29 = dma.hbm_to_vmem [thread:$0]  %s2810_s2, 512, %s24_s22, [#allocation3], %s2164_s24, %s2164_s24, %s2165_s25  }
   0xe   :  { %s2166_s28 = smov [#allocation5]  }
   0xf   :  { %s35_s29 = sshll.u32 %s2166_s28, 4  ;;  %s36_s29 = int_to_ptr.vmem [resolvable:$true] %s35_s29 }
  0x10   :  { %s2125_s30 = scalar_lea.vmem %s36_s29, 1024  ;;  %p2130_p6 = scmp.lt.s32.totalorder %s36_s29, %s36_s29 }
  0x11   :  { %p2126_p5 = scmp.ne.s32.totalorder %s36_s29, %s2125_s30  ;;  %p2131_p7 = scmp.lt.s32.totalorder %s2125_s30, %s2125_s30 }
  0x13   :  { %p2132_p8 = por %p2131_p7, %p2130_p6 }
  0x15   :  { %p2133_p9 = pnand %p2132_p8, %p2126_p5 }
  0x17   :  { %2136 = shalt.err (!%p2133_p9)
}
  0x18   :  { %s2167_s7 = smov 256   ;;  %s2168_s8 = smov 16  }
  0x19   :  { %41 = dma.hbm_to_vmem [thread:$0]  %s2811_s3, 1024, %s36_s29, [#allocation6], %s2167_s7, %s2167_s7, %s2168_s8  }
  0x1a   :  { %2157 = dma.done.wait [#allocation3], 512  }
  0x1b   :  { %2158 = vsyncadd [#allocation3], 4294966784 }
  0x1c   :  { %2159 = dma.done.wait [#allocation6], 1024  }
  0x1d   :  { %2160 = vsyncadd [#allocation6], 4294966272  ;;  %v2169_v0 = vmov 0   ;;  %v57_v1 = vld [vmem:[%s2808_s0 + $0x20] sm:$0xff]  ;;  %vm150_vm0 = vcmask 1043456   ;;  %v2229_v2 = vld [vmem:[%s2808_s0 + $0x10] sm:$0xff]  ;;  %v405_v59 = vlaneseq }
  0x1e   :  { %189 = vmatprep.mubr.bf16.mxu0 %v2169_v0  ;;  %1957 = vset.pattern.permute.xlu0 %v2169_v0  ;;  %v2234_v3 = vld [vmem:[%s2808_s0 + $0x18] sm:$0xff]  ;;  %v1749_v4 = vcombine.high %v57_v1, %v57_v1  ;;  %v1748_v5 = vcombine.low %v57_v1, %v57_v1  ;;  %v2238_v7 = vld [vmem:[#allocation2] sm:$0xff]  ;;  %v2262_v13 = vld [vmem:[%s2812_s4 + $0x70] sm:$0xff]   ;;  %vm146_vm1 = vcmask 326656   ;;  %vm360_vm2 = vcmask 130048   ;;  %s2179_s24 = smov [#allocation7]  }
  0x1f   :  { %v1747_v6 = vcombine.high %v2229_v2, %v2234_v3  ;;  %v1981_v9 = vld [vmem:[%s2808_s0 + $0x4] ss:$8 sps:$4 sm:$0xff]   ;;  %118 = vperm.xlu0 %1957, %v2238_v7   ;;  %v2249_v10 = vld [vmem:[%s2812_s4 + $0x78] sm:$0xff]   ;;  %v1746_v11 = vcombine.low %v2229_v2, %v2234_v3  ;;  %v1983_v14 = vld [vmem:[%s2808_s0] ss:$8 sps:$4 sm:$0xff]   ;;  %v406_v60 = vshrl.u32 %v405_v59, 7 }
  0x20   :  { %1750 = vmatprep.subr.msk.bf16.mxu0 %vm150_vm0, %v1749_v4  ;;  %v152_v8 = vsel %vm150_vm0, %v1748_v5, 0  ;;  %v2256_v12 = vld [vmem:[%s2812_s4 + $0x38] sm:$0xff]   ;;  %1796 = vmatprep.subr.bf16.mxu1 %v2249_v10  ;;  %v2271_v15 = vld [vmem:[%s2812_s4 + $0x30] sm:$0xff]   ;;  %v2277_v16 = vld [vmem:[%s2812_s4 + $0x68] sm:$0xff]   ;;  %vm564_vm3 = vcmask 64512   ;;  %vm1003_vm12 = vcmask 1041408  }
  0x21   :  { %168 = vmatpush1.bf16.msra.mxu0 %v152_v8  ;;  %1797 = vmatpush3.bf16.msra.mxu1 %v2256_v12  ;;  %v2282_v17 = vld [vmem:[%s2812_s4 + $0x28] sm:$0xff]   ;;  %v2287_v18 = vld [vmem:[%s2812_s4 + $0x60] sm:$0xff]   ;;  %v2306_v21 = vld [vmem:[%s2812_s4 + $0x58] sm:$0xff]   ;;  %v2384_v61 = vsub.s32 0, %v406_v60  ;;  %vm936_vm13 = vcmask 261120   ;;  %vm999_vm14 = vcmask 31744  }
  0x22   :  { %169 = vmatprep.subr.bf16.mxu0 %v1747_v6  ;;  %1798 = vmatprep.subr.bf16.mxu1 %v2262_v13  ;;  %v58_v19 = vld [vmem:[%s2809_s1] sm:$0xf]  ;;  %v2311_v22 = vld [vmem:[%s2812_s4 + $0x18] sm:$0xff]   ;;  %v2318_v23 = vld [vmem:[%s2812_s4 + $0x50] sm:$0xff]   ;;  %s1734_s25 = sshll.u32 %s2179_s24, 4  ;;  %s1735_s25 = int_to_ptr.vmem [resolvable:$true] %s1734_s25 }
  0x23   :  { %v2300_v20 = vld [vmem:[%s2812_s4 + $0x20] sm:$0xff]   ;;  %v2323_v24 = vld [vmem:[%s2812_s4 + $0x10] sm:$0xff]   ;;  %v2328_v25 = vld [vmem:[%s2812_s4 + $0x48] sm:$0xff]   ;;  %s2137_s26 = scalar_lea.vmem %s1735_s25, 256  ;;  %p2142_p11 = scmp.lt.s32.totalorder %s1735_s25, %s1735_s25 }
  0x24   :  { %v2335_v26 = vld [vmem:[%s2812_s4 + $0x8] sm:$0xff]   ;;  %v2341_v27 = vld [vmem:[%s2812_s4 + $0x40] sm:$0xff]   ;;  %p2138_p10 = scmp.ne.s32.totalorder %s1735_s25, %s2137_s26  ;;  %p2143_p12 = scmp.lt.s32.totalorder %s2137_s26, %s2137_s26 }
  0x25   :  { %170 = vmatpush1.bf16.msra.mxu0 %v1746_v11  ;;  %1799 = vmatpush3.bf16.msra.mxu1 %v2271_v15  ;;  %v2347_v28 = vld [vmem:[%s2812_s4] sm:$0xff]  }
  0x26   :  { %171 = vmatprep.subr.bf16.mxu0 %v1981_v9  ;;  %1800 = vmatprep.subr.bf16.mxu1 %v2277_v16  ;;  %v2355_v50 = vld [vmem:[%s2813_s5 + $0x4] ss:$8 sps:$4 sm:$0xff]   ;;  %v2360_v51 = vld [vmem:[%s2813_s5] ss:$8 sps:$4 sm:$0xff]   ;;  %p2144_p13 = por %p2143_p12, %p2142_p11 }
  0x27   :  { %v74_v59 = vld [vmem:[#allocation5] sm:$0xff] }
  0x28   :  { %p2145_p0 = pnand %p2144_p13, %p2138_p10 }
  0x29   :  { %172 = vmatpush1.bf16.msra.mxu0 %v1983_v14  ;;  %1801 = vmatpush3.bf16.msra.mxu1 %v2282_v17 }
  0x2a   :  { %1802 = vmatprep.subr.bf16.mxu1 %v2287_v18  ;;  %378 = vmatprep.subr.bf16.mxu0 %v2355_v50 }
  0x2c   :  { %1751 = vmatmul.mubr.msk.bf16.vlgmr.msra.gmra.mxu0 %vm146_vm1, %v58_v19 }
  0x2d   :  { %396 = vmatprep.mubr.bf16.mxu0 %v2169_v0  ;;  %1803 = vmatpush3.bf16.msra.mxu1 %v2300_v20 }
  0x2e   :  { %1804 = vmatprep.subr.bf16.mxu1 %v2306_v21  ;;  %379 = vmatpush1.bf16.msra.mxu0 %v2360_v51 }
  0x2f   :  { %1818 = vmatprep.subr.bf16.mxu0 %v2249_v10 }
  0x31   :  { %1805 = vmatpush3.bf16.msra.mxu1 %v2311_v22 }
  0x32   :  { %1806 = vmatprep.subr.bf16.mxu1 %v2318_v23 }
  0x35   :  { %1807 = vmatpush3.bf16.msra.mxu1 %v2323_v24 }
  0x36   :  { %1808 = vmatprep.subr.bf16.mxu1 %v2328_v25 }
  0x39   :  { %1809 = vmatpush3.bf16.msra.mxu1 %v2335_v26 }
  0x3a   :  { %1810 = vmatprep.subr.bf16.mxu1 %v2341_v27 }
  0x3d   :  { %1811 = vmatpush3.bf16.msra.mxu1 %v2347_v28 }
  0x3e   :  { %492 = vmatprep.subr.bf16.mxu1 %v2355_v50 }
  0x9a   :  { %v119_v29 = vpop.permute.xlu0 %118 }
  0xec   :  { %v191_v30 = vpop.f32.mrf.mxu0 }
  0xed   :  { %v192_v31 = vadd.f32 %v191_v30, %v119_v29 }
  0xee   :  { %v193_v32 = vpop.f32.mrf.mxu0 }
  0xef   :  { %v198_v33 = vrot.slane %v192_v31, 4  ;;  %v194_v34 = vadd.f32 %v193_v32, %v119_v29 }
  0xf0   :  { %v195_v35 = vpop.f32.mrf.mxu0 }
  0xf1   :  { %v199_v36 = vadd.f32 %v198_v33, %v192_v31  ;;  %v204_v37 = vrot.slane %v194_v34, 4 }
  0xf2   :  { %v196_v38 = vpop.f32.mrf.mxu0 }
  0xf3   :  { %v200_v39 = vrot.slane %v199_v36, 2  ;;  %v205_v40 = vadd.f32 %v204_v37, %v194_v34 }
  0xf5   :  { %v206_v41 = vrot.slane %v205_v40, 2  ;;  %v201_v42 = vadd.f32 %v200_v39, %v199_v36 }
  0xf7   :  { %v207_v43 = vadd.f32 %v206_v41, %v205_v40  ;;  %v202_v44 = vrot.slane %v201_v42, 1 }
  0xf9   :  { %v208_v45 = vrot.slane %v207_v43, 1  ;;  %v203_v46 = vadd.f32 %v202_v44, %v201_v42 }
  0xfb   :  { %v209_v47 = vadd.f32 %v208_v45, %v207_v43  ;;  %v210_v49 = vpack.c.bf16 %v203_v46, %v203_v46 }
  0xfd   :  { %v211_v48 = vpack.c.bf16 %v209_v47, %v209_v47 }
  0xff   :  { %340 = vmatprep.mubr.bf16.mxu1 %v211_v48 }
 0x100   :  { %341 = vmatmul.mubr.bf16.vlgmr.msra.gmra.mxu1 %v210_v49 }
 0x101   :  { %510 = vmatprep.mubr.bf16.mxu1 %v2169_v0  ;;  %493 = vmatpush1.bf16.msra.mxu1 %v2360_v51 }
 0x1c0   :  { %v1812_v52 = vpop.f32.mrf.mxu1 }
 0x1c2   :  { %v1813_v53 = vpop.f32.mrf.mxu1 }
 0x1c3   :  { %v1814_v54 = vadd.f32 %v1813_v53, %v1812_v52  ;;  %v2392_v53 = vld [vmem:[#allocation2 + $0x8] sm:$0xff] }
 0x1c4   :  { %v1815_v55 = vpop.f32.mrf.mxu1 }
 0x1c5   :  { %v348_v56 = vmul.f32 0.0078125, %v1814_v54  ;;  %v2170_v54 = vmov 1   ;;  %v2396_v55 = vld [vmem:[#allocation2 + $0x10] sm:$0xff] }
 0x1c6   :  { %v1816_v57 = vpop.f32.mrf.mxu1  ;;  %1959 = vset.pattern.permute.xlu1 %v2170_v54  ;;  %1958 = vset.pattern.permute.xlu0 %v2170_v54 }
 0x1c7   :  { %v349_v58 = vpack.c.bf16 %v348_v56, %v348_v56  ;;  %541 = vperm.xlu1 %1959, %v2392_v53   ;;  %536 = vperm.xlu0 %1958, %v2238_v7   ;;  %v2399_v56 = vld [vmem:[#allocation2 + $0x18] sm:$0xff] }
 0x1c9   :  { %1770 = vmatmul.mubr.msk.bf16.vlgmr.msra.gmra.mxu0 %vm360_vm2, %v349_v58 }
 0x1ca   :  { %1819 = vmatpush3.bf16.msra.mxu0 %v2256_v12 }
 0x1cb   :  { %1820 = vmatprep.subr.bf16.mxu0 %v2262_v13  ;;  %546 = vperm.xlu1 %1959, %v2396_v55  }
 0x1ce   :  { %1821 = vmatpush3.bf16.msra.mxu0 %v2271_v15 }
 0x1cf   :  { %1822 = vmatprep.subr.bf16.mxu0 %v2277_v16  ;;  %551 = vperm.xlu1 %1959, %v2399_v56  }
 0x1d2   :  { %1823 = vmatpush3.bf16.msra.mxu0 %v2282_v17 }
 0x1d3   :  { %1824 = vmatprep.subr.bf16.mxu0 %v2287_v18 }
 0x1d6   :  { %1825 = vmatpush3.bf16.msra.mxu0 %v2300_v20 }
 0x1d7   :  { %1826 = vmatprep.subr.bf16.mxu0 %v2306_v21 }
 0x1da   :  { %1827 = vmatpush3.bf16.msra.mxu0 %v2311_v22 }
 0x1db   :  { %1828 = vmatprep.subr.bf16.mxu0 %v2318_v23 }
 0x1de   :  { %1829 = vmatpush3.bf16.msra.mxu0 %v2323_v24 }
 0x1df   :  { %1830 = vmatprep.subr.bf16.mxu0 %v2328_v25 }
 0x1e2   :  { %1831 = vmatpush3.bf16.msra.mxu0 %v2335_v26 }
 0x1e3   :  { %1832 = vmatprep.subr.bf16.mxu0 %v2341_v27 }
 0x1e6   :  { %1833 = vmatpush3.bf16.msra.mxu0 %v2347_v28 }
 0x1e7   :  { %825 = vmatprep.subr.bf16.mxu0 %v2355_v50 }
 0x289   :  { %v398_v62 = vpop.f32.mrf.mxu0 }
 0x28a   :  { %v408_v63 = vrot.slane %v398_v62, %v2384_v61 }
 0x28b   :  { %v400_v1 = vpop.f32.mrf.mxu0 }
 0x28c   :  { %v413_v4 = vsub.f32 %v192_v31, %v408_v63  ;;  %v412_v5 = vrot.slane %v400_v1, %v2384_v61  ;;  %v75_v1 = vld [vmem:[#allocation5 + $0x8] sm:$0xff] }
 0x28d   :  { %v402_v6 = vpop.f32.mrf.mxu0 }
 0x28e   :  { %v415_v8 = vmul.f32 %v413_v4, %v413_v4  ;;  %v414_v9 = vsub.f32 %v194_v34, %v412_v5  ;;  %v76_v6 = vld [vmem:[#allocation5 + $0x10] sm:$0xff] }
 0x28f   :  { %v403_v11 = vpop.f32.mrf.mxu0 }
 0x290   :  { %v417_v14 = vrot.slane %v415_v8, 4  ;;  %v416_v19 = vmul.f32 %v414_v9, %v414_v9 }
 0x292   :  { %v418_v29 = vadd.f32 %v417_v14, %v415_v8  ;;  %v423_v30 = vrot.slane %v416_v19, 4  ;;  %v77_v14 = vld [vmem:[#allocation5 + $0x18] sm:$0xff] }
 0x294   :  { %v419_v32 = vrot.slane %v418_v29, 2  ;;  %v424_v33 = vadd.f32 %v423_v30, %v416_v19 }
 0x296   :  { %v420_v35 = vadd.f32 %v419_v32, %v418_v29  ;;  %v425_v36 = vrot.slane %v424_v33, 2 }
 0x298   :  { %v426_v37 = vadd.f32 %v425_v36, %v424_v33  ;;  %v421_v38 = vrot.slane %v420_v35, 1 }
 0x29a   :  { %v427_v39 = vrot.slane %v426_v37, 1  ;;  %v422_v40 = vadd.f32 %v421_v38, %v420_v35 }
 0x29c   :  { %v428_v41 = vadd.f32 %v427_v39, %v426_v37  ;;  %v429_v42 = vpack.c.bf16 %v422_v40, %v422_v40  ;;  %v537_v37 = vpop.permute.xlu0 %536  ;;  %v542_v39 = vpop.permute.xlu1 %541 }
 0x29e   :  { %v430_v31 = vpack.c.bf16 %v428_v41, %v428_v41 }
 0x2a0   :  { %463 = vmatprep.mubr.bf16.mxu0 %v430_v31 }
 0x2a1   :  { %464 = vmatmul.mubr.bf16.vlgmr.msra.gmra.mxu0 %v429_v42 }
 0x2a2   :  { %826 = vmatpush1.bf16.msra.mxu0 %v2360_v51  ;;  %843 = vmatprep.mubr.bf16.mxu0 %v2169_v0 }
 0x361   :  { %v1834_v34 = vpop.f32.mrf.mxu0 }
 0x363   :  { %v1835_v43 = vpop.f32.mrf.mxu0 }
 0x364   :  { %v1836_v44 = vadd.f32 %v1835_v43, %v1834_v34 }
 0x365   :  { %v1837_v45 = vpop.f32.mrf.mxu0 }
 0x366   :  { %v471_v46 = vmul.f32 0.0078125, %v1836_v44 }
 0x367   :  { %v1838_v47 = vpop.f32.mrf.mxu0 }
 0x368   :  { %v472_v48 = vadd.f32 1e-05, %v471_v46  ;;  %v547_v47 = vpop.permute.xlu1 %546 }
 0x36a   :  { %2007 = vrsqrt.f32 %v472_v48 }
 0x377   :  { %v2008_v49 = vpop.eup %2007 }
 0x378   :  { %v474_v52 = vpack.c.bf16 %v2008_v49, %v2008_v49 }
 0x37a   :  { %1771 = vmatmul.mubr.msk.bf16.vlgmr.msra.gmra.mxu1 %vm360_vm2, %v474_v52 }
 0x37b   :  { %609 = vmatprep.mubr.bf16.mxu1 %v2169_v0 }
 0x43a   :  { %v512_v57 = vpop.f32.mrf.mxu1 }
 0x43b   :  { %v522_v58 = vrot.slane %v512_v57, %v2384_v61 }
 0x43c   :  { %v514_v60 = vpop.f32.mrf.mxu1 }
 0x43d   :  { %v527_v62 = vmul.f32 %v522_v58, %v413_v4  ;;  %v526_v63 = vrot.slane %v514_v60, %v2384_v61  ;;  %v2003_v4 = vld [vmem:[%s2809_s1 + $0x10] sm:$0xff]  }
 0x43e   :  { %v516_v5 = vpop.f32.mrf.mxu1 }
 0x43f   :  { %v529_v8 = vmul.f32 %v527_v62, %v74_v59  ;;  %v528_v11 = vmul.f32 %v526_v63, %v414_v9  ;;  %v2004_v9 = vld [vmem:[%s2809_s1 + $0x18] sm:$0xff]  }
 0x440   :  { %v517_v19 = vpop.f32.mrf.mxu1 }
 0x441   :  { %v530_v29 = vmul.f32 %v528_v11, %v75_v1  ;;  %v531_v30 = vadd.f32 %v529_v8, %v76_v6 }
 0x443   :  { %v532_v32 = vadd.f32 %v530_v29, %v77_v14  ;;  %v533_v33 = vpack.c.bf16 %v531_v30, %v531_v30 }
 0x445   :  { %v534_v35 = vpack.c.bf16 %v532_v32, %v532_v32  ;;  %v572_v36 = vsel %vm150_vm0, %v533_v33, 0  ;;  %v552_v32 = vpop.permute.xlu1 %551 }
 0x447   :  { %1774 = vmatprep.subr.msk.bf16.mxu1 %vm150_vm0, %v534_v35 }
 0x448   :  { %592 = vmatpush1.bf16.msra.mxu1 %v572_v36 }
 0x449   :  { %1840 = vmatprep.subr.bf16.mxu1 %v2249_v10 }
 0x44b   :  { %1775 = vmatmul.mubr.msk.bf16.vlgmr.msra.gmra.mxu1 %vm564_vm3, %v2003_v4 }
 0x44c   :  { %619 = vmatprep.mubr.bf16.mxu1 %v2169_v0  ;;  %1841 = vmatpush3.bf16.msra.mxu1 %v2256_v12 }
 0x44d   :  { %1842 = vmatprep.subr.bf16.mxu1 %v2262_v13 }
 0x450   :  { %1843 = vmatpush3.bf16.msra.mxu1 %v2271_v15 }
 0x451   :  { %1844 = vmatprep.subr.bf16.mxu1 %v2277_v16 }
 0x453   :  { %1776 = vmatmul.mubr.msk.bf16.gmra.mxu1 %vm564_vm3, %v2004_v9 }
 0x454   :  { %1845 = vmatpush3.bf16.msra.mxu1 %v2282_v17 }
 0x455   :  { %1846 = vmatprep.subr.bf16.mxu1 %v2287_v18 }
 0x458   :  { %1847 = vmatpush3.bf16.msra.mxu1 %v2300_v20 }
 0x459   :  { %1848 = vmatprep.subr.bf16.mxu1 %v2306_v21 }
 0x45c   :  { %1849 = vmatpush3.bf16.msra.mxu1 %v2311_v22 }
 0x45d   :  { %1850 = vmatprep.subr.bf16.mxu1 %v2318_v23 }
 0x460   :  { %1851 = vmatpush3.bf16.msra.mxu1 %v2323_v24 }
 0x461   :  { %1852 = vmatprep.subr.bf16.mxu1 %v2328_v25 }
 0x464   :  { %1853 = vmatpush3.bf16.msra.mxu1 %v2335_v26 }
 0x465   :  { %1854 = vmatprep.subr.bf16.mxu1 %v2341_v27 }
 0x468   :  { %1855 = vmatpush3.bf16.msra.mxu1 %v2347_v28 }
 0x469   :  { %1868 = vmatprep.subr.bf16.mxu1 %v2249_v10 }
 0x50b   :  { %v611_v38 = vpop.f32.mrf.mxu1 }
 0x50c   :  { %v2432_v40 = vadd.f32 %v611_v38, %v537_v37 }
 0x50d   :  { %v613_v41 = vpop.f32.mrf.mxu1 }
 0x50e   :  { %v630_v31 = vmul.f32 %v2432_v40, %v2432_v40  ;;  %v2436_v42 = vadd.f32 %v613_v41, %v537_v37 }
 0x50f   :  { %v615_v34 = vpop.f32.mrf.mxu1 }
 0x510   :  { %v638_v43 = vmul.f32 %v630_v31, %v2432_v40  ;;  %v631_v44 = vmul.f32 %v2436_v42, %v2436_v42  ;;  %v2441_v45 = vadd.f32 %v615_v34, %v542_v39 }
 0x511   :  { %v617_v10 = vpop.f32.mrf.mxu1 }
 0x512   :  { %v646_v46 = vmul.f32 0.044715, %v638_v43  ;;  %v639_v48 = vmul.f32 %v631_v44, %v2436_v42  ;;  %v632_v49 = vmul.f32 %v2441_v45, %v2441_v45  ;;  %v2446_v52 = vadd.f32 %v617_v10, %v542_v39 }
 0x513   :  { %v621_v54 = vpop.f32.mrf.mxu1 }
 0x514   :  { %v654_v57 = vadd.f32 %v646_v46, %v2432_v40  ;;  %v647_v58 = vmul.f32 0.044715, %v639_v48  ;;  %v640_v59 = vmul.f32 %v632_v49, %v2441_v45  ;;  %v633_v60 = vmul.f32 %v2446_v52, %v2446_v52 }
 0x515   :  { %v2452_v62 = vadd.f32 %v621_v54, %v547_v47  ;;  %v623_v63 = vpop.f32.mrf.mxu1 }
 0x516   :  { %v662_v1 = vmul.f32 0.7978846, %v654_v57  ;;  %v655_v5 = vadd.f32 %v647_v58, %v2436_v42  ;;  %v648_v6 = vmul.f32 0.044715, %v640_v59  ;;  %v641_v8 = vmul.f32 %v633_v60, %v2446_v52 }
 0x517   :  { %v634_v11 = vmul.f32 %v2452_v62, %v2452_v62  ;;  %v2458_v14 = vadd.f32 %v623_v63, %v547_v47  ;;  %v625_v19 = vpop.f32.mrf.mxu1 }
 0x518   :  { %2009 = vtanh.f32 %v662_v1  ;;  %v663_v29 = vmul.f32 0.7978846, %v655_v5  ;;  %v656_v30 = vadd.f32 %v648_v6, %v2441_v45  ;;  %v649_v33 = vmul.f32 0.044715, %v641_v8 }
 0x519   :  { %v642_v35 = vmul.f32 %v634_v11, %v2452_v62  ;;  %v635_v36 = vmul.f32 %v2458_v14, %v2458_v14  ;;  %v2464_v4 = vadd.f32 %v625_v19, %v552_v32  ;;  %v627_v9 = vpop.f32.mrf.mxu1 }
 0x51a   :  { %2011 = vtanh.f32 %v663_v29  ;;  %v664_v37 = vmul.f32 0.7978846, %v656_v30  ;;  %v657_v38 = vadd.f32 %v649_v33, %v2446_v52  ;;  %v2467_v39 = vadd.f32 %v627_v9, %v552_v32 }
 0x51b   :  { %v650_v41 = vmul.f32 0.044715, %v642_v35  ;;  %v643_v31 = vmul.f32 %v635_v36, %v2458_v14  ;;  %v636_v34 = vmul.f32 %v2464_v4, %v2464_v4 }
 0x51c   :  { %2013 = vtanh.f32 %v664_v37  ;;  %v665_v43 = vmul.f32 0.7978846, %v657_v38  ;;  %v637_v44 = vmul.f32 %v2467_v39, %v2467_v39 }
 0x51d   :  { %v658_v10 = vadd.f32 %v650_v41, %v2452_v62  ;;  %v651_v46 = vmul.f32 0.044715, %v643_v31  ;;  %v644_v47 = vmul.f32 %v636_v34, %v2464_v4 }
 0x51e   :  { %2015 = vtanh.f32 %v665_v43  ;;  %v645_v48 = vmul.f32 %v637_v44, %v2467_v39 }
 0x51f   :  { %v666_v49 = vmul.f32 0.7978846, %v658_v10  ;;  %v659_v54 = vadd.f32 %v651_v46, %v2458_v14  ;;  %v652_v57 = vmul.f32 0.044715, %v644_v47 }
 0x520   :  { %v653_v58 = vmul.f32 0.044715, %v645_v48 }
 0x521   :  { %2017 = vtanh.f32 %v666_v49  ;;  %v667_v59 = vmul.f32 0.7978846, %v659_v54  ;;  %v660_v60 = vadd.f32 %v652_v57, %v2464_v4 }
 0x522   :  { %v661_v63 = vadd.f32 %v653_v58, %v2467_v39 }
 0x523   :  { %2019 = vtanh.f32 %v667_v59  ;;  %v668_v1 = vmul.f32 0.7978846, %v660_v60 }
 0x524   :  { %v669_v5 = vmul.f32 0.7978846, %v661_v63 }
 0x525   :  { %v2010_v6 = vpop.eup %2009  ;;  %2021 = vtanh.f32 %v668_v1 }
 0x526   :  { %2023 = vtanh.f32 %v669_v5  ;;  %v678_v11 = vadd.f32 1.0, %v2010_v6 }
 0x527   :  { %v2012_v8 = vpop.eup %2011 }
 0x528   :  { %v679_v19 = vadd.f32 1.0, %v2012_v8  ;;  %v686_v35 = vmul.f32 0.5, %v678_v11 }
 0x529   :  { %v2014_v29 = vpop.eup %2013 }
 0x52a   :  { %v687_v30 = vmul.f32 0.5, %v679_v19  ;;  %v680_v32 = vadd.f32 1.0, %v2014_v29  ;;  %v2487_v34 = vmul.f32 %v686_v35, %v2432_v40 }
 0x52b   :  { %v2016_v33 = vpop.eup %2015 }
 0x52c   :  { %v688_v36 = vmul.f32 0.5, %v680_v32  ;;  %v681_v9 = vadd.f32 1.0, %v2016_v33  ;;  %v2481_v38 = vmul.f32 %v687_v30, %v2436_v42  ;;  %v702_v40 = vmul.f32 %v2487_v34, %v2487_v34 }
 0x52e   :  { %v2018_v37 = vpop.eup %2017  ;;  %v2484_v41 = vmul.f32 %v688_v36, %v2441_v45  ;;  %v689_v31 = vmul.f32 0.5, %v681_v9  ;;  %v703_v42 = vmul.f32 %v2481_v38, %v2481_v38 }
 0x52f   :  { %v682_v43 = vadd.f32 1.0, %v2018_v37 }
 0x530   :  { %v2020_v44 = vpop.eup %2019  ;;  %v2490_v10 = vmul.f32 %v689_v31, %v2446_v52  ;;  %v704_v46 = vmul.f32 %v2484_v41, %v2484_v41 }
 0x531   :  { %v683_v47 = vadd.f32 1.0, %v2020_v44  ;;  %v690_v54 = vmul.f32 0.5, %v682_v43 }
 0x532   :  { %v2022_v48 = vpop.eup %2021  ;;  %v705_v45 = vmul.f32 %v2490_v10, %v2490_v10  ;;  %v710_v63 = vpack.c.bf16 %v704_v46, %v702_v40 }
 0x533   :  { %v2024_v49 = vpop.eup %2023  ;;  %v691_v57 = vmul.f32 0.5, %v683_v47  ;;  %v684_v58 = vadd.f32 1.0, %v2022_v48  ;;  %v2504_v6 = vmul.f32 %v690_v54, %v2452_v62 }
 0x534   :  { %v685_v52 = vadd.f32 1.0, %v2024_v49  ;;  %v711_v59 = vpack.c.bf16 %v705_v45, %v703_v42 }
 0x535   :  { %v692_v60 = vmul.f32 0.5, %v684_v58  ;;  %v2501_v1 = vmul.f32 %v691_v57, %v2458_v14 }
 0x536   :  { %v693_v5 = vmul.f32 0.5, %v685_v52  ;;  %746 = vmatprep.mubr.bf16.mxu1 %v711_v59 }
 0x537   :  { %v2507_v8 = vmul.f32 %v692_v60, %v2464_v4  ;;  %747 = vmatmul.mubr.bf16.vlgmr.msra.gmra.mxu1 %v710_v63  ;;  %v707_v14 = vmul.f32 %v2501_v1, %v2501_v1  ;;  %v706_v4 = vmul.f32 %v2504_v6, %v2504_v6 }
 0x538   :  { %v2510_v11 = vmul.f32 %v693_v5, %v2467_v39  ;;  %1869 = vmatpush3.bf16.msra.mxu1 %v2256_v12  ;;  %v2171_v12 = vmov 6  }
 0x539   :  { %v708_v19 = vmul.f32 %v2507_v8, %v2507_v8  ;;  %1870 = vmatprep.subr.bf16.mxu1 %v2262_v13  ;;  %1961 = vset.pattern.permute.xlu1 %v2171_v12  ;;  %v2172_v13 = vmov 7  }
 0x53a   :  { %v709_v62 = vmul.f32 %v2510_v11, %v2510_v11  ;;  %1960 = vset.pattern.permute.xlu0 %v2171_v12  ;;  %885 = vperm.xlu1 %1961, %v2399_v56  }
 0x53b   :  { %v712_v39 = vpack.c.bf16 %v708_v19, %v706_v4  ;;  %881 = vperm.xlu0 %1960, %v2396_v55  }
 0x53c   :  { %v713_v29 = vpack.c.bf16 %v709_v62, %v707_v14  ;;  %1871 = vmatpush3.bf16.msra.mxu1 %v2271_v15 }
 0x53d   :  { %1872 = vmatprep.subr.bf16.mxu1 %v2277_v16 }
 0x53e   :  { %754 = vmatprep.mubr.bf16.mxu1 %v713_v29  ;;  %1962 = vset.pattern.permute.xlu1 %v2172_v13 }
 0x53f   :  { %755 = vmatmul.mubr.bf16.gmra.mxu1 %v712_v39  ;;  %1963 = vset.pattern.permute.xlu0 %v2172_v13 }
 0x540   :  { %1873 = vmatpush3.bf16.msra.mxu1 %v2282_v17  ;;  %905 = vperm.xlu1 %1962, %v2396_v55  }
 0x541   :  { %1874 = vmatprep.subr.bf16.mxu1 %v2287_v18  ;;  %909 = vperm.xlu0 %1963, %v2399_v56  }
 0x544   :  { %1875 = vmatpush3.bf16.msra.mxu1 %v2300_v20  ;;  %1964 = vset.pattern.permute.xlu1 %v2171_v12 }
 0x545   :  { %1876 = vmatprep.subr.bf16.mxu1 %v2306_v21  ;;  %897 = vperm.xlu0 %1963, %v2238_v7  }
 0x546   :  { %873 = vperm.xlu1 %1964, %v2238_v7  }
 0x548   :  { %1877 = vmatpush3.bf16.msra.mxu1 %v2311_v22 }
 0x549   :  { %1878 = vmatprep.subr.bf16.mxu1 %v2318_v23 }
 0x54a   :  { %877 = vperm.xlu1 %1964, %v2392_v53  }
 0x54c   :  { %1879 = vmatpush3.bf16.msra.mxu1 %v2323_v24 }
 0x54d   :  { %1880 = vmatprep.subr.bf16.mxu1 %v2328_v25 }
 0x54e   :  { %1965 = vset.pattern.permute.xlu1 %v2172_v13 }
 0x54f   :  { %901 = vperm.xlu1 %1965, %v2392_v53  }
 0x550   :  { %1881 = vmatpush3.bf16.msra.mxu1 %v2335_v26 }
 0x551   :  { %1882 = vmatprep.subr.bf16.mxu1 %v2341_v27 }
 0x554   :  { %1883 = vmatpush3.bf16.msra.mxu1 %v2347_v28 }
 0x555   :  { %1240 = vmatprep.subr.bf16.mxu1 %v2355_v50 }
 0x5f7   :  { %v1856_v15 = vpop.f32.mrf.mxu1 }
 0x5f9   :  { %v1857_v16 = vpop.f32.mrf.mxu1 }
 0x5fa   :  { %v1858_v17 = vadd.f32 %v1857_v16, %v1856_v15 }
 0x5fb   :  { %v1859_v18 = vpop.f32.mrf.mxu1 }
 0x5fc   :  { %2025 = vrsqrt.f32 %v1858_v17  ;;  %vm765_vm4 = vcmp.eq.f32.partialorder %v1858_v17, inf  ;;  %v768_v35 = vand.u32 2147483648, %v1858_v17  ;;  %vm767_vm5 = vcmp.eq.f32.partialorder %v1858_v17, 0.0 }
 0x5fd   :  { %v1860_v20 = vpop.f32.mrf.mxu1 }
 0x5fe   :  { %v1861_v21 = vadd.f32 %v1860_v20, %v1859_v18  ;;  %v2174_v18 = vmov 3   ;;  %v886_v20 = vpop.permute.xlu1 %885 }
 0x5ff   :  { %v1862_v22 = vpop.f32.mrf.mxu1  ;;  %1967 = vset.pattern.permute.xlu1 %v2174_v18 }
 0x600   :  { %2027 = vrsqrt.f32 %v1861_v21  ;;  %vm772_vm6 = vcmp.eq.f32.partialorder %v1861_v21, inf  ;;  %v775_v44 = vand.u32 2147483648, %v1861_v21  ;;  %vm774_vm7 = vcmp.eq.f32.partialorder %v1861_v21, 0.0  ;;  %991 = vperm.xlu1 %1967, %v2238_v7  }
 0x601   :  { %v1863_v23 = vpop.f32.mrf.mxu1 }
 0x602   :  { %v1864_v24 = vadd.f32 %v1863_v23, %v1862_v22 }
 0x603   :  { %v1865_v25 = vpop.f32.mrf.mxu1 }
 0x604   :  { %2029 = vrsqrt.f32 %v1864_v24  ;;  %vm779_vm8 = vcmp.eq.f32.partialorder %v1864_v24, inf  ;;  %v782_v49 = vand.u32 2147483648, %v1864_v24  ;;  %vm781_vm9 = vcmp.eq.f32.partialorder %v1864_v24, 0.0 }
 0x605   :  { %v1866_v26 = vpop.f32.mrf.mxu1 }
 0x606   :  { %v1867_v30 = vadd.f32 %v1866_v26, %v1865_v25  ;;  %v882_v26 = vpop.permute.xlu0 %881 }
 0x608   :  { %2031 = vrsqrt.f32 %v1867_v30  ;;  %vm786_vm10 = vcmp.eq.f32.partialorder %v1867_v30, inf  ;;  %v789_v59 = vand.u32 2147483648, %v1867_v30  ;;  %vm788_vm11 = vcmp.eq.f32.partialorder %v1867_v30, 0.0 }
 0x609   :  { %v2026_v32 = vpop.eup %2025 }
 0x60a   :  { %v764_v33 = vmul.f32 %v2026_v32, %v1858_v17 }
 0x60c   :  { %v766_v36 = vsel %vm765_vm4, %v1858_v17, %v764_v33  ;;  %v2173_v17 = vmov 2  }
 0x60d   :  { %v2028_v9 = vpop.eup %2027  ;;  %v769_v37 = vsel %vm767_vm5, %v768_v35, %v766_v36  ;;  %1966 = vset.pattern.permute.xlu0 %v2173_v17 }
 0x60e   :  { %v771_v31 = vmul.f32 %v2028_v9, %v1861_v21  ;;  %v791_v43 = vadd.f32 1e-06, %v769_v37  ;;  %933 = vperm.xlu0 %1966, %v2238_v7   ;;  %v910_v7 = vpop.permute.xlu0 %909 }
 0x610   :  { %v773_v46 = vsel %vm772_vm6, %v1861_v21, %v771_v31  ;;  %2033 = vrcp.f32 %v791_v43  ;;  %v906_v21 = vpop.permute.xlu1 %905 }
 0x611   :  { %v2030_v47 = vpop.eup %2029  ;;  %v776_v48 = vsel %vm774_vm7, %v775_v44, %v773_v46 }
 0x612   :  { %v792_v42 = vadd.f32 1e-06, %v776_v48  ;;  %v778_v45 = vmul.f32 %v2030_v47, %v1864_v24 }
 0x614   :  { %2035 = vrcp.f32 %v792_v42  ;;  %v780_v40 = vsel %vm779_vm8, %v1864_v24, %v778_v45  ;;  %v874_v24 = vpop.permute.xlu1 %873 }
 0x615   :  { %v2032_v54 = vpop.eup %2031  ;;  %v783_v57 = vsel %vm781_vm9, %v782_v49, %v780_v40  ;;  %v1780_v40 = vrot.slane %v2229_v2, 10 }
 0x616   :  { %v785_v58 = vmul.f32 %v2032_v54, %v1867_v30  ;;  %v793_v52 = vadd.f32 1e-06, %v783_v57  ;;  %v1781_v54 = vrot.slane %v2234_v3, 10 }
 0x618   :  { %v787_v60 = vsel %vm786_vm10, %v1867_v30, %v785_v58  ;;  %2037 = vrcp.f32 %v793_v52  ;;  %v878_v35 = vpop.permute.xlu1 %877 }
 0x619   :  { %v790_v63 = vsel %vm788_vm11, %v789_v59, %v787_v60 }
 0x61a   :  { %v794_v5 = vadd.f32 1e-06, %v790_v63 }
 0x61c   :  { %2039 = vrcp.f32 %v794_v5  ;;  %v902_v59 = vpop.permute.xlu1 %901 }
 0x61d   :  { %v2034_v19 = vpop.eup %2033 }
 0x61e   :  { %v799_v62 = vmul.f32 %v2034_v19, %v769_v37 }
 0x621   :  { %v2036_v14 = vpop.eup %2035 }
 0x622   :  { %v800_v4 = vmul.f32 %v2036_v14, %v776_v48 }
 0x624   :  { %v803_v29 = vpack.c.bf16 %v800_v4, %v799_v62  ;;  %v898_v62 = vpop.permute.xlu0 %897 }
 0x625   :  { %v2038_v39 = vpop.eup %2037 }
 0x626   :  { %1777 = vmatmul.mubr.msk.bf16.vlgmr.msra.gmra.mxu0 %vm360_vm2, %v803_v29  ;;  %v801_v13 = vmul.f32 %v2038_v39, %v783_v57 }
 0x627   :  { %853 = vmatprep.mubr.bf16.mxu0 %v2169_v0 }
 0x629   :  { %v2040_v12 = vpop.eup %2039 }
 0x62a   :  { %v802_v15 = vmul.f32 %v2040_v12, %v790_v63 }
 0x62c   :  { %v804_v16 = vpack.c.bf16 %v802_v15, %v801_v13  ;;  %v984_v13 = vmax.bf16 %v1780_v40, %v2229_v2  ;;  %v988_v15 = vmax.bf16 %v1781_v54, %v2234_v3 }
 0x62e   :  { %1778 = vmatmul.mubr.msk.bf16.gmra.mxu0 %vm360_vm2, %v804_v16 }
 0x62f   :  { %972 = vmatprep.mubr.bf16.mxu0 %v2169_v0 }
 0x6e6   :  { %v845_v22 = vpop.f32.mrf.mxu0 }
 0x6e7   :  { %v864_v48 = vmul.f32 %v845_v22, %v2487_v34 }
 0x6e8   :  { %v847_v23 = vpop.f32.mrf.mxu0 }
 0x6e9   :  { %v865_v37 = vmul.f32 %v847_v23, %v2481_v38  ;;  %v888_v14 = vmul.f32 %v874_v24, %v864_v48 }
 0x6ea   :  { %v849_v25 = vpop.f32.mrf.mxu0 }
 0x6eb   :  { %v866_v43 = vmul.f32 %v849_v25, %v2484_v41  ;;  %v889_v57 = vmul.f32 %v874_v24, %v865_v37 }
 0x6ec   :  { %v851_v30 = vpop.f32.mrf.mxu0 }
 0x6ed   :  { %v867_v33 = vmul.f32 %v851_v30, %v2490_v10  ;;  %v890_v52 = vmul.f32 %v878_v35, %v866_v43  ;;  %v913_v39 = vadd.f32 %v898_v62, %v889_v57 }
 0x6ee   :  { %v855_v32 = vpop.f32.mrf.mxu0 }
 0x6ef   :  { %v868_v36 = vmul.f32 %v855_v32, %v2504_v6  ;;  %v891_v46 = vmul.f32 %v878_v35, %v867_v33  ;;  %v914_v16 = vadd.f32 %v902_v59, %v890_v52  ;;  %v934_v35 = vpop.permute.xlu0 %933 }
 0x6f0   :  { %v857_v9 = vpop.f32.mrf.mxu0 }
 0x6f1   :  { %v869_v31 = vmul.f32 %v857_v9, %v2501_v1  ;;  %v892_v42 = vmul.f32 %v882_v26, %v868_v36  ;;  %v915_v63 = vadd.f32 %v902_v59, %v891_v46  ;;  %v922_v2 = vadd.f32 %v914_v16, %v2484_v41  ;;  %v64_v41 = vld [vmem:[%s2809_s1 + $0x30] sm:$0xf]  ;;  %v992_v9 = vpop.permute.xlu1 %991 }
 0x6f2   :  { %v859_v44 = vpop.f32.mrf.mxu0 }
 0x6f3   :  { %v893_v47 = vmul.f32 %v882_v26, %v869_v31  ;;  %v870_v45 = vmul.f32 %v859_v44, %v2507_v8  ;;  %v916_v4 = vadd.f32 %v906_v21, %v892_v42  ;;  %v923_v18 = vadd.f32 %v915_v63, %v2490_v10 }
 0x6f4   :  { %v861_v49 = vpop.f32.mrf.mxu0  ;;  %v989_v26 = vmax.bf16 %v988_v15, %v984_v13 }
 0x6f5   :  { %v871_v58 = vmul.f32 %v861_v49, %v2510_v11  ;;  %v894_v60 = vmul.f32 %v886_v20, %v870_v45  ;;  %v917_v5 = vadd.f32 %v906_v21, %v893_v47  ;;  %v924_v24 = vadd.f32 %v916_v4, %v2504_v6 }
 0x6f6   :  { %v921_v21 = vadd.f32 %v913_v39, %v2481_v38  ;;  %v1783_v10 = vcombine.high %v989_v26, %v989_v26  ;;  %v63_v38 = vld [vmem:[%s2809_s1 + $0x20] sm:$0xf] }
 0x6f7   :  { %v895_v19 = vmul.f32 %v886_v20, %v871_v58  ;;  %v918_v29 = vadd.f32 %v910_v7, %v894_v60  ;;  %v925_v22 = vadd.f32 %v917_v5, %v2501_v1  ;;  %v912_v20 = vadd.f32 %v898_v62, %v888_v14 }
 0x6f8   :  { %v929_v3 = vpack.c.bf16 %v923_v18, %v921_v21  ;;  %v1782_v1 = vcombine.low %v989_v26, %v989_v26  ;;  %v2076_v18 = vld [vmem:[%s2812_s4 + $0x38] sm:$0xff]   ;;  %v2082_v21 = vld [vmem:[%s2812_s4 + $0x20] sm:$0xff]  }
 0x6f9   :  { %v919_v12 = vadd.f32 %v910_v7, %v895_v19  ;;  %v926_v17 = vadd.f32 %v918_v29, %v2507_v8  ;;  %v920_v8 = vadd.f32 %v912_v20, %v2487_v34  ;;  %v2584_v34 = vld [vmem:[%s2812_s4 + $0x78] sm:$0xff]   ;;  %v2080_v20 = vld [vmem:[%s2812_s4 + $0x28] sm:$0xff]  }
 0x6fa   :  { %v1005_v6 = vsel %vm1003_vm12, %v1782_v1, 0  ;;  %v2084_v26 = vld [vmem:[%s2812_s4 + $0x18] sm:$0xff]  }
 0x6fb   :  { %v927_v23 = vadd.f32 %v919_v12, %v2510_v11  ;;  %v930_v30 = vpack.c.bf16 %v926_v17, %v924_v24  ;;  %v928_v32 = vpack.c.bf16 %v922_v2, %v920_v8  ;;  %v2081_v24 = vld [vmem:[%s2812_s4 + $0x60] sm:$0xff]   ;;  %v2085_v2 = vld [vmem:[%s2812_s4 + $0x50] sm:$0xff]   ;;  %v2088_v8 = vld [vmem:[%s2812_s4 + $0x8] sm:$0xff]  }
 0x6fd   :  { %v931_v25 = vpack.c.bf16 %v927_v23, %v925_v22  ;;  %v2078_v22 = vld [vmem:[%s2812_s4 + $0x30] sm:$0xff]   ;;  %v2079_v23 = vld [vmem:[%s2812_s4 + $0x68] sm:$0xff]  }
 0x6ff   :  { %952 = vmatprep.subr.bf16.mxu0 %v931_v25  ;;  %v2083_v25 = vld [vmem:[%s2812_s4 + $0x58] sm:$0xff]  }
 0x700   :  { %953 = vmatpush1.bf16.msra.mxu0 %v930_v30  ;;  %v2086_v30 = vld [vmem:[%s2812_s4 + $0x10] sm:$0xff]  }
 0x701   :  { %954 = vmatprep.subr.bf16.mxu0 %v929_v3  ;;  %v2087_v3 = vld [vmem:[%s2812_s4 + $0x48] sm:$0xff]  }
 0x704   :  { %955 = vmatpush1.bf16.msra.mxu0 %v928_v32 }
 0x705   :  { %1784 = vmatprep.subr.msk.bf16.mxu0 %vm1003_vm12, %v1783_v10 }
 0x707   :  { %1779 = vmatmul.mubr.msk.bf16.vlgmr.msra.gmra.mxu0 %vm936_vm13, %v63_v38 }
 0x708   :  { %1025 = vmatpush1.bf16.msra.mxu0 %v1005_v6  ;;  %1042 = vmatprep.mubr.bf16.mxu0 %v2169_v0 }
 0x709   :  { %1126 = vmatprep.subr.bf16.mxu0 %v2355_v50 }
 0x70f   :  { %1785 = vmatmul.mubr.msk.bf16.vlgmr.msra.gmra.mxu0 %vm999_vm14, %v64_v41 }
 0x710   :  { %1127 = vmatpush1.bf16.msra.mxu0 %v2360_v51  ;;  %1144 = vmatprep.mubr.bf16.mxu0 %v2169_v0 }
 0x711   :  { %1890 = vmatprep.subr.bf16.mxu0 %v2584_v34 }
 0x7c7   :  { %v974_v11 = vpop.f32.mrf.mxu0 }
 0x7c8   :  { %v975_v31 = vadd.f32 %v974_v11, %v934_v35 }
 0x7c9   :  { %v976_v33 = vpop.f32.mrf.mxu0 }
 0x7ca   :  { %v977_v44 = vadd.f32 %v976_v33, %v934_v35 }
 0x7cb   :  { %v978_v50 = vpop.f32.mrf.mxu0 }
 0x7cd   :  { %v979_v36 = vpop.f32.mrf.mxu0 }
 0x7cf   :  { %v1044_v37 = vpop.f32.mrf.mxu0 }
 0x7d0   :  { %v1045_v7 = vadd.f32 %v1044_v37, %v992_v9 }
 0x7d1   :  { %v1046_v43 = vpop.f32.mrf.mxu0 }
 0x7d2   :  { %v2587_v46 = vadd.f32 %v1045_v7, %v975_v31  ;;  %v1047_v47 = vadd.f32 %v1046_v43, %v992_v9 }
 0x7d3   :  { %v1048_v48 = vpop.f32.mrf.mxu0 }
 0x7d4   :  { %v1053_v42 = vrot.slane %v2587_v46, 4  ;;  %v2590_v45 = vadd.f32 %v1047_v47, %v977_v44 }
 0x7d5   :  { %v1049_v49 = vpop.f32.mrf.mxu0 }
 0x7d6   :  { %v1054_v40 = vadd.f32 %v1053_v42, %v2587_v46  ;;  %v1059_v54 = vrot.slane %v2590_v45, 4 }
 0x7d8   :  { %v1055_v57 = vrot.slane %v1054_v40, 2  ;;  %v1060_v58 = vadd.f32 %v1059_v54, %v2590_v45  ;;  %v2090_v54 = vld [vmem:[%s2812_s4] sm:$0xff]  }
 0x7da   :  { %v1056_v52 = vadd.f32 %v1055_v57, %v1054_v40  ;;  %v1061_v59 = vrot.slane %v1060_v58, 2  ;;  %v2089_v40 = vld [vmem:[%s2812_s4 + $0x40] sm:$0xff]  }
 0x7dc   :  { %v1062_v60 = vadd.f32 %v1061_v59, %v1060_v58  ;;  %v1057_v63 = vrot.slane %v1056_v52, 1 }
 0x7de   :  { %v1063_v5 = vrot.slane %v1062_v60, 1  ;;  %v1058_v19 = vadd.f32 %v1057_v63, %v1056_v52 }
 0x7e0   :  { %v1064_v14 = vadd.f32 %v1063_v5, %v1062_v60  ;;  %v1065_v4 = vpack.c.bf16 %v1058_v19, %v1058_v19 }
 0x7e2   :  { %v1066_v62 = vpack.c.bf16 %v1064_v14, %v1064_v14 }
 0x7e4   :  { %1099 = vmatprep.mubr.bf16.mxu1 %v1066_v62  ;;  %v2175_v62 = vmov 4  }
 0x7e5   :  { %1100 = vmatmul.mubr.bf16.vlgmr.msra.gmra.mxu1 %v1065_v4  ;;  %1968 = vset.pattern.permute.xlu1 %v2175_v62  ;;  %v2660_v4 = vld [vmem:[#allocation2] sm:$0xff] }
 0x7e6   :  { %1241 = vmatpush1.bf16.msra.mxu1 %v2360_v51  ;;  %1258 = vmatprep.mubr.bf16.mxu1 %v2169_v0  ;;  %v2077_v51 = vld [vmem:[%s2812_s4 + $0x70] sm:$0xff]  }
 0x7e7   :  { %1969 = vset.pattern.permute.xlu0 %v2175_v62  ;;  %1284 = vperm.xlu1 %1968, %v2660_v4  }
 0x7e8   :  { %1288 = vperm.xlu0 %1969, %v2392_v53   ;;  %v81_v53 = vld [vmem:[#allocation5 + $0x38] sm:$0xff] }
 0x7eb   :  { %1292 = vperm.xlu1 %1968, %v2396_v55  }
 0x7ef   :  { %1296 = vperm.xlu1 %1968, %v2399_v56  }
 0x8a5   :  { %v1884_v29 = vpop.f32.mrf.mxu1 }
 0x8a7   :  { %v1885_v39 = vpop.f32.mrf.mxu1 }
 0x8a8   :  { %v1886_v12 = vadd.f32 %v1885_v39, %v1884_v29 }
 0x8a9   :  { %v1887_v13 = vpop.f32.mrf.mxu1 }
 0x8aa   :  { %v1107_v15 = vmul.f32 0.0078125, %v1886_v12  ;;  %v78_v12 = vld [vmem:[#allocation5 + $0x20] sm:$0xff] }
 0x8ab   :  { %v1888_v16 = vpop.f32.mrf.mxu1 }
 0x8ac   :  { %v1108_v17 = vpack.c.bf16 %v1107_v15, %v1107_v15 }
 0x8ae   :  { %1786 = vmatmul.mubr.msk.bf16.vlgmr.msra.gmra.mxu0 %vm360_vm2, %v1108_v17  ;;  %v79_v17 = vld [vmem:[#allocation5 + $0x28] sm:$0xff] }
 0x8af   :  { %1891 = vmatpush3.bf16.msra.mxu0 %v2076_v18 }
 0x8b0   :  { %1892 = vmatprep.subr.bf16.mxu0 %v2077_v51 }
 0x8b3   :  { %1893 = vmatpush3.bf16.msra.mxu0 %v2078_v22 }
 0x8b4   :  { %1894 = vmatprep.subr.bf16.mxu0 %v2079_v23 }
 0x8b7   :  { %1895 = vmatpush3.bf16.msra.mxu0 %v2080_v20 }
 0x8b8   :  { %1896 = vmatprep.subr.bf16.mxu0 %v2081_v24 }
 0x8bb   :  { %1897 = vmatpush3.bf16.msra.mxu0 %v2082_v21 }
 0x8bc   :  { %1898 = vmatprep.subr.bf16.mxu0 %v2083_v25 }
 0x8bf   :  { %1899 = vmatpush3.bf16.msra.mxu0 %v2084_v26 }
 0x8c0   :  { %1900 = vmatprep.subr.bf16.mxu0 %v2085_v2 }
 0x8c3   :  { %1901 = vmatpush3.bf16.msra.mxu0 %v2086_v30 }
 0x8c4   :  { %1902 = vmatprep.subr.bf16.mxu0 %v2087_v3 }
 0x8c7   :  { %1903 = vmatpush3.bf16.msra.mxu0 %v2088_v8 }
 0x8c8   :  { %1904 = vmatprep.subr.bf16.mxu0 %v2341_v27 }
 0x8cb   :  { %1905 = vmatpush3.bf16.msra.mxu0 %v2347_v28 }
 0x8cc   :  { %1912 = vmatprep.subr.bf16.mxu0 %v2584_v34 }
 0x96e   :  { %v1146_v10 = vpop.f32.mrf.mxu0 }
 0x96f   :  { %v1156_v1 = vrot.slane %v1146_v10, %v2384_v61 }
 0x970   :  { %v1148_v32 = vpop.f32.mrf.mxu0 }
 0x971   :  { %v2642_v38 = vsub.f32 %v2587_v46, %v1156_v1  ;;  %v1160_v6 = vrot.slane %v1148_v32, %v2384_v61 }
 0x972   :  { %v1150_v41 = vpop.f32.mrf.mxu0 }
 0x973   :  { %v1163_v11 = vmul.f32 %v2642_v38, %v2642_v38  ;;  %v2648_v33 = vsub.f32 %v2590_v45, %v1160_v6 }
 0x974   :  { %v1151_v27 = vpop.f32.mrf.mxu0 }
 0x975   :  { %v1165_v28 = vrot.slane %v1163_v11, 4  ;;  %v1164_v34 = vmul.f32 %v2648_v33, %v2648_v33 }
 0x977   :  { %v1166_v50 = vadd.f32 %v1165_v28, %v1163_v11  ;;  %v1171_v35 = vrot.slane %v1164_v34, 4 }
 0x979   :  { %v1167_v36 = vrot.slane %v1166_v50, 2  ;;  %v1172_v9 = vadd.f32 %v1171_v35, %v1164_v34 }
 0x97b   :  { %v1168_v37 = vadd.f32 %v1167_v36, %v1166_v50  ;;  %v1173_v31 = vrot.slane %v1172_v9, 2 }
 0x97d   :  { %v1174_v7 = vadd.f32 %v1173_v31, %v1172_v9  ;;  %v1169_v43 = vrot.slane %v1168_v37, 1 }
 0x97f   :  { %v1175_v44 = vrot.slane %v1174_v7, 1  ;;  %v1170_v47 = vadd.f32 %v1169_v43, %v1168_v37 }
 0x981   :  { %v1176_v48 = vadd.f32 %v1175_v44, %v1174_v7  ;;  %v1177_v49 = vpack.c.bf16 %v1170_v47, %v1170_v47 }
 0x983   :  { %v1178_v42 = vpack.c.bf16 %v1176_v48, %v1176_v48 }
 0x985   :  { %1211 = vmatprep.mubr.bf16.mxu0 %v1178_v42 }
 0x986   :  { %1212 = vmatmul.mubr.bf16.vlgmr.msra.gmra.mxu0 %v1177_v49 }
 0x987   :  { %1913 = vmatpush3.bf16.msra.mxu0 %v2076_v18 }
 0x988   :  { %1914 = vmatprep.subr.bf16.mxu0 %v2077_v51  ;;  %v80_v51 = vld [vmem:[#allocation5 + $0x30] sm:$0xff] }
 0x98b   :  { %1915 = vmatpush3.bf16.msra.mxu0 %v2078_v22 }
 0x98c   :  { %1916 = vmatprep.subr.bf16.mxu0 %v2079_v23 }
 0x98f   :  { %1917 = vmatpush3.bf16.msra.mxu0 %v2080_v20 }
 0x990   :  { %1918 = vmatprep.subr.bf16.mxu0 %v2081_v24 }
 0x993   :  { %1919 = vmatpush3.bf16.msra.mxu0 %v2082_v21 }
 0x994   :  { %1920 = vmatprep.subr.bf16.mxu0 %v2083_v25 }
 0x997   :  { %1921 = vmatpush3.bf16.msra.mxu0 %v2084_v26 }
 0x998   :  { %1922 = vmatprep.subr.bf16.mxu0 %v2085_v2  ;;  %v2092_v2 = vld [vmem:[%s2813_s5 + $0x4] ss:$8 sps:$4 sm:$0xff]  }
 0x99b   :  { %1923 = vmatpush3.bf16.msra.mxu0 %v2086_v30  ;;  %v2093_v30 = vld [vmem:[%s2813_s5] ss:$8 sps:$4 sm:$0xff]  }
 0x99c   :  { %1924 = vmatprep.subr.bf16.mxu0 %v2087_v3  ;;  %v2006_v3 = vld [vmem:[%s2809_s1 + $0x48] sm:$0xff]  }
 0x99f   :  { %1925 = vmatpush3.bf16.msra.mxu0 %v2088_v8  ;;  %v1285_v8 = vpop.permute.xlu1 %1284 }
 0x9a0   :  { %1926 = vmatprep.subr.bf16.mxu0 %v2089_v40 }
 0x9a3   :  { %1927 = vmatpush3.bf16.msra.mxu0 %v2090_v54  ;;  %v1293_v35 = vpop.permute.xlu1 %1292 }
 0xa46   :  { %v1906_v57 = vpop.f32.mrf.mxu0 }
 0xa48   :  { %v1907_v58 = vpop.f32.mrf.mxu0 }
 0xa49   :  { %v1908_v52 = vadd.f32 %v1907_v58, %v1906_v57 }
 0xa4a   :  { %v1909_v59 = vpop.f32.mrf.mxu0 }
 0xa4b   :  { %v1219_v60 = vmul.f32 0.0078125, %v1908_v52 }
 0xa4c   :  { %v1910_v63 = vpop.f32.mrf.mxu0 }
 0xa4d   :  { %v1220_v5 = vadd.f32 1e-05, %v1219_v60 }
 0xa4f   :  { %2041 = vrsqrt.f32 %v1220_v5  ;;  %v1297_v5 = vpop.permute.xlu1 %1296 }
 0xa5c   :  { %v2042_v19 = vpop.eup %2041 }
 0xa5d   :  { %v1222_v14 = vpack.c.bf16 %v2042_v19, %v2042_v19 }
 0xa5f   :  { %1787 = vmatmul.mubr.msk.bf16.vlgmr.msra.gmra.mxu1 %vm360_vm2, %v1222_v14 }
 0xa60   :  { %1353 = vmatprep.mubr.bf16.mxu1 %v2169_v0 }
 0xb1f   :  { %v1260_v29 = vpop.f32.mrf.mxu1 }
 0xb20   :  { %v1270_v39 = vrot.slane %v1260_v29, %v2384_v61 }
 0xb21   :  { %v1262_v13 = vpop.f32.mrf.mxu1 }
 0xb22   :  { %v1275_v15 = vmul.f32 %v1270_v39, %v2642_v38  ;;  %v1274_v16 = vrot.slane %v1262_v13, %v2384_v61  ;;  %v2005_v61 = vld [vmem:[%s2809_s1 + $0x40] sm:$0xff]   ;;  %v1289_v38 = vpop.permute.xlu0 %1288 }
 0xb23   :  { %v1264_v18 = vpop.f32.mrf.mxu1 }
 0xb24   :  { %v1277_v22 = vmul.f32 %v1275_v15, %v78_v12  ;;  %v1276_v23 = vmul.f32 %v1274_v16, %v2648_v33 }
 0xb25   :  { %v1265_v20 = vpop.f32.mrf.mxu1 }
 0xb26   :  { %v1278_v55 = vmul.f32 %v1276_v23, %v79_v17  ;;  %v1279_v24 = vadd.f32 %v1277_v22, %v80_v51 }
 0xb28   :  { %v1280_v56 = vadd.f32 %v1278_v55, %v81_v53  ;;  %v1281_v21 = vpack.c.bf16 %v1279_v24, %v1279_v24 }
 0xb2a   :  { %v1282_v25 = vpack.c.bf16 %v1280_v56, %v1280_v56  ;;  %v1316_v26 = vsel %vm150_vm0, %v1281_v21, 0 }
 0xb2c   :  { %1790 = vmatprep.subr.msk.bf16.mxu1 %vm150_vm0, %v1282_v25 }
 0xb2d   :  { %1336 = vmatpush1.bf16.msra.mxu1 %v1316_v26 }
 0xb2e   :  { %1569 = vmatprep.subr.bf16.mxu1 %v2092_v2 }
 0xb30   :  { %1791 = vmatmul.mubr.msk.bf16.vlgmr.msra.gmra.mxu1 %vm564_vm3, %v2005_v61 }
 0xb31   :  { %1363 = vmatprep.mubr.bf16.mxu1 %v2169_v0  ;;  %1570 = vmatpush1.bf16.msra.mxu1 %v2093_v30 }
 0xb38   :  { %1792 = vmatmul.mubr.msk.bf16.gmra.mxu1 %vm564_vm3, %v2006_v3 }
 0xb39   :  { %1587 = vmatprep.mubr.bf16.mxu1 %v2169_v0 }
 0xbf0   :  { %v1355_v10 = vpop.f32.mrf.mxu1 }
 0xbf1   :  { %v2688_v1 = vadd.f32 %v1355_v10, %v1285_v8 }
 0xbf2   :  { %v1357_v32 = vpop.f32.mrf.mxu1 }
 0xbf3   :  { %v1374_v6 = vmul.f32 %v2688_v1, %v2688_v1  ;;  %v2692_v41 = vadd.f32 %v1357_v32, %v1285_v8 }
 0xbf4   :  { %v1359_v11 = vpop.f32.mrf.mxu1 }
 0xbf5   :  { %v1382_v33 = vmul.f32 %v1374_v6, %v2688_v1  ;;  %v1375_v27 = vmul.f32 %v2692_v41, %v2692_v41  ;;  %v2697_v28 = vadd.f32 %v1359_v11, %v1289_v38 }
 0xbf6   :  { %v1361_v34 = vpop.f32.mrf.mxu1 }
 0xbf7   :  { %v1390_v50 = vmul.f32 0.044715, %v1382_v33  ;;  %v1383_v36 = vmul.f32 %v1375_v27, %v2692_v41  ;;  %v1376_v9 = vmul.f32 %v2697_v28, %v2697_v28  ;;  %v2702_v37 = vadd.f32 %v1361_v34, %v1289_v38 }
 0xbf8   :  { %v1365_v31 = vpop.f32.mrf.mxu1 }
 0xbf9   :  { %v1398_v7 = vadd.f32 %v1390_v50, %v2688_v1  ;;  %v1391_v43 = vmul.f32 0.044715, %v1383_v36  ;;  %v1384_v44 = vmul.f32 %v1376_v9, %v2697_v28  ;;  %v1377_v47 = vmul.f32 %v2702_v37, %v2702_v37 }
 0xbfa   :  { %v2708_v48 = vadd.f32 %v1365_v31, %v1293_v35  ;;  %v1367_v42 = vpop.f32.mrf.mxu1 }
 0xbfb   :  { %v1406_v49 = vmul.f32 0.7978846, %v1398_v7  ;;  %v1399_v40 = vadd.f32 %v1391_v43, %v2692_v41  ;;  %v1392_v54 = vmul.f32 0.044715, %v1384_v44  ;;  %v1385_v57 = vmul.f32 %v1377_v47, %v2702_v37 }
 0xbfc   :  { %v1378_v58 = vmul.f32 %v2708_v48, %v2708_v48  ;;  %v2714_v52 = vadd.f32 %v1367_v42, %v1293_v35  ;;  %v1369_v59 = vpop.f32.mrf.mxu1 }
 0xbfd   :  { %2043 = vtanh.f32 %v1406_v49  ;;  %v1407_v60 = vmul.f32 0.7978846, %v1399_v40  ;;  %v1400_v63 = vadd.f32 %v1392_v54, %v2697_v28  ;;  %v1393_v19 = vmul.f32 0.044715, %v1385_v57 }
 0xbfe   :  { %v1386_v14 = vmul.f32 %v1378_v58, %v2708_v48  ;;  %v1379_v62 = vmul.f32 %v2714_v52, %v2714_v52  ;;  %v2720_v29 = vadd.f32 %v1369_v59, %v1297_v5  ;;  %v1371_v39 = vpop.f32.mrf.mxu1 }
 0xbff   :  { %2045 = vtanh.f32 %v1407_v60  ;;  %v1408_v12 = vmul.f32 0.7978846, %v1400_v63  ;;  %v1401_v13 = vadd.f32 %v1393_v19, %v2702_v37  ;;  %v2723_v15 = vadd.f32 %v1371_v39, %v1297_v5 }
 0xc00   :  { %v1394_v16 = vmul.f32 0.044715, %v1386_v14  ;;  %v1387_v17 = vmul.f32 %v1379_v62, %v2714_v52  ;;  %v1380_v18 = vmul.f32 %v2720_v29, %v2720_v29 }
 0xc01   :  { %2047 = vtanh.f32 %v1408_v12  ;;  %v1409_v51 = vmul.f32 0.7978846, %v1401_v13  ;;  %v1381_v22 = vmul.f32 %v2723_v15, %v2723_v15 }
 0xc02   :  { %v1402_v23 = vadd.f32 %v1394_v16, %v2708_v48  ;;  %v1395_v53 = vmul.f32 0.044715, %v1387_v17  ;;  %v1388_v20 = vmul.f32 %v1380_v18, %v2720_v29 }
 0xc03   :  { %2049 = vtanh.f32 %v1409_v51  ;;  %v1389_v55 = vmul.f32 %v1381_v22, %v2723_v15  ;;  %v2095_v22 = vld [vmem:[#allocation2 + $0x10] sm:$0xff] }
 0xc04   :  { %v1410_v24 = vmul.f32 0.7978846, %v1402_v23  ;;  %v1403_v56 = vadd.f32 %v1395_v53, %v2714_v52  ;;  %v1396_v21 = vmul.f32 0.044715, %v1388_v20  ;;  %v2177_v23 = vmov 9   ;;  %v2096_v53 = vld [vmem:[#allocation2 + $0x8] sm:$0xff] }
 0xc05   :  { %v1397_v25 = vmul.f32 0.044715, %v1389_v55 }
 0xc06   :  { %2051 = vtanh.f32 %v1410_v24  ;;  %v1411_v26 = vmul.f32 0.7978846, %v1403_v56  ;;  %v1404_v61 = vadd.f32 %v1396_v21, %v2720_v29 }
 0xc07   :  { %v1405_v2 = vadd.f32 %v1397_v25, %v2723_v15 }
 0xc08   :  { %2053 = vtanh.f32 %v1411_v26  ;;  %v1412_v30 = vmul.f32 0.7978846, %v1404_v61 }
 0xc09   :  { %v1413_v3 = vmul.f32 0.7978846, %v1405_v2 }
 0xc0a   :  { %v2044_v8 = vpop.eup %2043  ;;  %2055 = vtanh.f32 %v1412_v30 }
 0xc0b   :  { %2057 = vtanh.f32 %v1413_v3  ;;  %v1422_v32 = vadd.f32 1.0, %v2044_v8 }
 0xc0c   :  { %v2046_v10 = vpop.eup %2045 }
 0xc0d   :  { %v1423_v38 = vadd.f32 1.0, %v2046_v10  ;;  %v1430_v34 = vmul.f32 0.5, %v1422_v32 }
 0xc0e   :  { %v2048_v6 = vpop.eup %2047 }
 0xc0f   :  { %v1431_v11 = vmul.f32 0.5, %v1423_v38  ;;  %v1424_v33 = vadd.f32 1.0, %v2048_v6  ;;  %v2743_v43 = vmul.f32 %v1430_v34, %v2688_v1 }
 0xc10   :  { %v2050_v27 = vpop.eup %2049 }
 0xc11   :  { %v1432_v50 = vmul.f32 0.5, %v1424_v33  ;;  %v1425_v35 = vadd.f32 1.0, %v2050_v27  ;;  %v2737_v9 = vmul.f32 %v1431_v11, %v2692_v41  ;;  %v1446_v60 = vmul.f32 %v2743_v43, %v2743_v43 }
 0xc13   :  { %v2052_v36 = vpop.eup %2051  ;;  %v2740_v31 = vmul.f32 %v1432_v50, %v2697_v28  ;;  %v1433_v7 = vmul.f32 0.5, %v1425_v35  ;;  %v1447_v41 = vmul.f32 %v2737_v9, %v2737_v9 }
 0xc14   :  { %v1426_v44 = vadd.f32 1.0, %v2052_v36 }
 0xc15   :  { %v2054_v47 = vpop.eup %2053  ;;  %v2746_v42 = vmul.f32 %v1433_v7, %v2702_v37  ;;  %v1448_v40 = vmul.f32 %v2740_v31, %v2740_v31 }
 0xc16   :  { %v1427_v49 = vadd.f32 1.0, %v2054_v47  ;;  %v1434_v58 = vmul.f32 0.5, %v1426_v44 }
 0xc17   :  { %v2056_v54 = vpop.eup %2055  ;;  %v1449_v28 = vmul.f32 %v2746_v42, %v2746_v42  ;;  %v1454_v19 = vpack.c.bf16 %v1448_v40, %v1446_v60 }
 0xc18   :  { %v2058_v57 = vpop.eup %2057  ;;  %v1435_v1 = vmul.f32 0.5, %v1427_v49  ;;  %v1428_v59 = vadd.f32 1.0, %v2056_v54  ;;  %v2760_v39 = vmul.f32 %v1434_v58, %v2708_v48 }
 0xc19   :  { %v1429_v37 = vadd.f32 1.0, %v2058_v57  ;;  %v1455_v63 = vpack.c.bf16 %v1449_v28, %v1447_v41 }
 0xc1a   :  { %v1436_v5 = vmul.f32 0.5, %v1428_v59  ;;  %v2757_v14 = vmul.f32 %v1435_v1, %v2714_v52  ;;  %v1450_v48 = vmul.f32 %v2760_v39, %v2760_v39 }
 0xc1b   :  { %v1437_v62 = vmul.f32 0.5, %v1429_v37  ;;  %1490 = vmatprep.mubr.bf16.mxu0 %v1455_v63 }
 0xc1c   :  { %v2763_v12 = vmul.f32 %v1436_v5, %v2720_v29  ;;  %1491 = vmatmul.mubr.bf16.vlgmr.msra.gmra.mxu0 %v1454_v19  ;;  %v1451_v17 = vmul.f32 %v2757_v14, %v2757_v14  ;;  %v2176_v29 = vmov 8  }
 0xc1d   :  { %v2766_v13 = vmul.f32 %v1437_v62, %v2723_v15  ;;  %1971 = vset.pattern.permute.xlu1 %v2176_v29  ;;  %1970 = vset.pattern.permute.xlu0 %v2176_v29  ;;  %v2094_v15 = vld [vmem:[#allocation2 + $0x18] sm:$0xff] }
 0xc1e   :  { %v1452_v16 = vmul.f32 %v2763_v12, %v2763_v12  ;;  %1629 = vperm.xlu1 %1971, %v2094_v15   ;;  %1625 = vperm.xlu0 %1970, %v2095_v22  }
 0xc1f   :  { %v1453_v52 = vmul.f32 %v2766_v13, %v2766_v13 }
 0xc20   :  { %v1456_v51 = vpack.c.bf16 %v1452_v16, %v1450_v48 }
 0xc21   :  { %v1457_v18 = vpack.c.bf16 %v1453_v52, %v1451_v17 }
 0xc22   :  { %1972 = vset.pattern.permute.xlu1 %v2177_v23  ;;  %1973 = vset.pattern.permute.xlu0 %v2177_v23 }
 0xc23   :  { %1498 = vmatprep.mubr.bf16.mxu0 %v1457_v18  ;;  %1649 = vperm.xlu1 %1972, %v2095_v22  }
 0xc24   :  { %1499 = vmatmul.mubr.bf16.gmra.mxu0 %v1456_v51  ;;  %1653 = vperm.xlu0 %1973, %v2094_v15   ;;  %v2178_v51 = vmov 5  }
 0xc27   :  { %1974 = vset.pattern.permute.xlu1 %v2176_v29 }
 0xc28   :  { %1641 = vperm.xlu0 %1973, %v2660_v4   ;;  %1617 = vperm.xlu1 %1974, %v2660_v4  }
 0xc2c   :  { %1621 = vperm.xlu1 %1974, %v2096_v53   ;;  %1976 = vset.pattern.permute.xlu0 %v2178_v51 }
 0xc2d   :  { %1677 = vperm.xlu0 %1976, %v2660_v4  }
 0xc30   :  { %1975 = vset.pattern.permute.xlu1 %v2177_v23 }
 0xc31   :  { %1645 = vperm.xlu1 %1975, %v2096_v53  }
 0xc99   :  { %v1630_v29 = vpop.permute.xlu1 %1629 }
 0xc9e   :  { %v1650_v15 = vpop.permute.xlu1 %1649 }
 0xca3   :  { %v1618_v53 = vpop.permute.xlu1 %1617 }
 0xcdc   :  { %v1928_v20 = vpop.f32.mrf.mxu0 }
 0xcde   :  { %v1929_v55 = vpop.f32.mrf.mxu0 }
 0xcdf   :  { %v1930_v24 = vadd.f32 %v1929_v55, %v1928_v20  ;;  %v1626_v55 = vpop.permute.xlu0 %1625 }
 0xce0   :  { %v1931_v56 = vpop.f32.mrf.mxu0 }
 0xce1   :  { %2059 = vrsqrt.f32 %v1930_v24  ;;  %vm1509_vm15 = vcmp.eq.f32.partialorder %v1930_v24, inf  ;;  %v1512_v38 = vand.u32 2147483648, %v1930_v24  ;;  %vm1511_vm0 = vcmp.eq.f32.partialorder %v1930_v24, 0.0 }
 0xce2   :  { %v1932_v21 = vpop.f32.mrf.mxu0 }
 0xce3   :  { %v1933_v25 = vadd.f32 %v1932_v21, %v1931_v56  ;;  %v1654_v4 = vpop.permute.xlu0 %1653 }
 0xce4   :  { %v1934_v26 = vpop.f32.mrf.mxu0 }
 0xce5   :  { %2061 = vrsqrt.f32 %v1933_v25  ;;  %vm1516_vm1 = vcmp.eq.f32.partialorder %v1933_v25, inf  ;;  %v1519_v50 = vand.u32 2147483648, %v1933_v25  ;;  %vm1518_vm3 = vcmp.eq.f32.partialorder %v1933_v25, 0.0 }
 0xce6   :  { %v1935_v61 = vpop.f32.mrf.mxu0 }
 0xce7   :  { %v1936_v2 = vadd.f32 %v1935_v61, %v1934_v26 }
 0xce8   :  { %v1937_v30 = vpop.f32.mrf.mxu0 }
 0xce9   :  { %2063 = vrsqrt.f32 %v1936_v2  ;;  %vm1523_vm4 = vcmp.eq.f32.partialorder %v1936_v2, inf  ;;  %v1526_v49 = vand.u32 2147483648, %v1936_v2  ;;  %vm1525_vm5 = vcmp.eq.f32.partialorder %v1936_v2, 0.0 }
 0xcea   :  { %v1938_v3 = vpop.f32.mrf.mxu0 }
 0xceb   :  { %v1939_v8 = vadd.f32 %v1938_v3, %v1937_v30 }
 0xced   :  { %2065 = vrsqrt.f32 %v1939_v8  ;;  %vm1530_vm6 = vcmp.eq.f32.partialorder %v1939_v8, inf  ;;  %v1533_v58 = vand.u32 2147483648, %v1939_v8  ;;  %vm1532_vm7 = vcmp.eq.f32.partialorder %v1939_v8, 0.0 }
 0xcee   :  { %v2060_v10 = vpop.eup %2059 }
 0xcef   :  { %v1508_v32 = vmul.f32 %v2060_v10, %v1930_v24 }
 0xcf1   :  { %v1510_v6 = vsel %vm1509_vm15, %v1930_v24, %v1508_v32 }
 0xcf2   :  { %v2062_v11 = vpop.eup %2061  ;;  %v1513_v33 = vsel %vm1511_vm0, %v1512_v38, %v1510_v6 }
 0xcf3   :  { %v1515_v27 = vmul.f32 %v2062_v11, %v1933_v25  ;;  %v1535_v34 = vadd.f32 1e-06, %v1513_v33 }
 0xcf5   :  { %v1517_v35 = vsel %vm1516_vm1, %v1933_v25, %v1515_v27  ;;  %2067 = vrcp.f32 %v1535_v34  ;;  %v1622_v25 = vpop.permute.xlu1 %1621 }
 0xcf6   :  { %v2064_v36 = vpop.eup %2063  ;;  %v1520_v7 = vsel %vm1518_vm3, %v1519_v50, %v1517_v35 }
 0xcf7   :  { %v1536_v44 = vadd.f32 1e-06, %v1520_v7  ;;  %v1522_v47 = vmul.f32 %v2064_v36, %v1936_v2 }
 0xcf9   :  { %2069 = vrcp.f32 %v1536_v44  ;;  %v1524_v40 = vsel %vm1523_vm4, %v1936_v2, %v1522_v47  ;;  %v1646_v34 = vpop.permute.xlu1 %1645 }
 0xcfa   :  { %v2066_v54 = vpop.eup %2065  ;;  %v1527_v41 = vsel %vm1525_vm5, %v1526_v49, %v1524_v40  ;;  %v1642_v49 = vpop.permute.xlu0 %1641 }
 0xcfb   :  { %v1529_v28 = vmul.f32 %v2066_v54, %v1939_v8  ;;  %v1537_v57 = vadd.f32 1e-06, %v1527_v41 }
 0xcfd   :  { %v1531_v1 = vsel %vm1530_vm6, %v1939_v8, %v1529_v28  ;;  %2071 = vrcp.f32 %v1537_v57 }
 0xcfe   :  { %v1534_v59 = vsel %vm1532_vm7, %v1533_v58, %v1531_v1 }
 0xcff   :  { %v1538_v60 = vadd.f32 1e-06, %v1534_v59 }
 0xd01   :  { %2073 = vrcp.f32 %v1538_v60 }
 0xd02   :  { %v2068_v37 = vpop.eup %2067 }
 0xd03   :  { %v1543_v5 = vmul.f32 %v2068_v37, %v1513_v33 }
 0xd06   :  { %v2070_v63 = vpop.eup %2069 }
 0xd07   :  { %v1544_v19 = vmul.f32 %v2070_v63, %v1520_v7 }
 0xd09   :  { %v1547_v62 = vpack.c.bf16 %v1544_v19, %v1543_v5 }
 0xd0a   :  { %v2072_v16 = vpop.eup %2071 }
 0xd0b   :  { %1793 = vmatmul.mubr.msk.bf16.vlgmr.msra.gmra.mxu1 %vm360_vm2, %v1547_v62  ;;  %v1545_v52 = vmul.f32 %v2072_v16, %v1527_v41 }
 0xd0c   :  { %1597 = vmatprep.mubr.bf16.mxu1 %v2169_v0 }
 0xd0e   :  { %v2074_v17 = vpop.eup %2073 }
 0xd0f   :  { %v1546_v48 = vmul.f32 %v2074_v17, %v1534_v59 }
 0xd11   :  { %v1548_v18 = vpack.c.bf16 %v1546_v48, %v1545_v52 }
 0xd13   :  { %1794 = vmatmul.mubr.msk.bf16.gmra.mxu1 %vm360_vm2, %v1548_v18 }
 0xd14   :  { %1715 = vmatprep.mubr.bf16.mxu1 %v2169_v0 }
 0xdcb   :  { %v1589_v22 = vpop.f32.mrf.mxu1 }
 0xdcc   :  { %v1608_v32 = vmul.f32 %v1589_v22, %v2743_v43 }
 0xdcd   :  { %v1591_v23 = vpop.f32.mrf.mxu1 }
 0xdce   :  { %v1609_v0 = vmul.f32 %v1591_v23, %v2737_v9  ;;  %v1632_v47 = vmul.f32 %v1618_v53, %v1608_v32 }
 0xdcf   :  { %v1593_v20 = vpop.f32.mrf.mxu1 }
 0xdd0   :  { %v1610_v30 = vmul.f32 %v1593_v20, %v2740_v31  ;;  %v1633_v33 = vmul.f32 %v1618_v53, %v1609_v0  ;;  %v1656_v37 = vadd.f32 %v1642_v49, %v1632_v47 }
 0xdd1   :  { %v1595_v24 = vpop.f32.mrf.mxu1 }
 0xdd2   :  { %v1611_v21 = vmul.f32 %v1595_v24, %v2746_v42  ;;  %v1634_v50 = vmul.f32 %v1622_v25, %v1610_v30  ;;  %v1657_v41 = vadd.f32 %v1642_v49, %v1633_v33  ;;  %v1664_v52 = vadd.f32 %v1656_v37, %v2743_v43 }
 0xdd3   :  { %v1599_v56 = vpop.f32.mrf.mxu1 }
 0xdd4   :  { %v1612_v26 = vmul.f32 %v1599_v56, %v2760_v39  ;;  %v1635_v8 = vmul.f32 %v1622_v25, %v1611_v21  ;;  %v1658_v57 = vadd.f32 %v1646_v34, %v1634_v50  ;;  %v1665_v5 = vadd.f32 %v1657_v41, %v2737_v9 }
 0xdd5   :  { %v1601_v61 = vpop.f32.mrf.mxu1 }
 0xdd6   :  { %v1613_v2 = vmul.f32 %v1601_v61, %v2757_v14  ;;  %v1636_v38 = vmul.f32 %v1626_v55, %v1612_v26  ;;  %v1659_v36 = vadd.f32 %v1646_v34, %v1635_v8  ;;  %v1666_v62 = vadd.f32 %v1658_v57, %v2740_v31 }
 0xdd7   :  { %v1603_v3 = vpop.f32.mrf.mxu1 }
 0xdd8   :  { %v1637_v10 = vmul.f32 %v1626_v55, %v1613_v2  ;;  %v1614_v6 = vmul.f32 %v1603_v3, %v2763_v12  ;;  %v1660_v40 = vadd.f32 %v1650_v15, %v1636_v38  ;;  %v1667_v1 = vadd.f32 %v1659_v36, %v2746_v42 }
 0xdd9   :  { %v1605_v11 = vpop.f32.mrf.mxu1  ;;  %v1672_v42 = vpack.c.bf16 %v1666_v62, %v1664_v52 }
 0xdda   :  { %v1615_v27 = vmul.f32 %v1605_v11, %v2766_v13  ;;  %v1638_v35 = vmul.f32 %v1630_v29, %v1614_v6  ;;  %v1661_v7 = vadd.f32 %v1650_v15, %v1637_v10  ;;  %v1668_v63 = vadd.f32 %v1660_v40, %v2760_v39  ;;  %v1678_v39 = vpop.permute.xlu0 %1677 }
 0xddb   :  { %v1673_v17 = vpack.c.bf16 %v1667_v1, %v1665_v5 }
 0xddc   :  { %v1639_v44 = vmul.f32 %v1630_v29, %v1615_v27  ;;  %v1662_v54 = vadd.f32 %v1654_v4, %v1638_v35  ;;  %v1669_v59 = vadd.f32 %v1661_v7, %v2757_v14  ;;  %v69_v14 = vld [vmem:[%s2809_s1 + $0x50] sm:$0xf] }
 0xdde   :  { %v1663_v28 = vadd.f32 %v1654_v4, %v1639_v44  ;;  %v1670_v58 = vadd.f32 %v1662_v54, %v2763_v12 }
 0xde0   :  { %v1671_v60 = vadd.f32 %v1663_v28, %v2766_v13  ;;  %v1674_v16 = vpack.c.bf16 %v1670_v58, %v1668_v63 }
 0xde2   :  { %v1675_v19 = vpack.c.bf16 %v1671_v60, %v1669_v59 }
 0xde4   :  { %1695 = vmatprep.subr.bf16.mxu1 %v1675_v19 }
 0xde5   :  { %1696 = vmatpush1.bf16.msra.mxu1 %v1674_v16 }
 0xde6   :  { %1697 = vmatprep.subr.bf16.mxu1 %v1673_v17 }
 0xde9   :  { %1698 = vmatpush1.bf16.msra.mxu1 %v1672_v42 }
 0xdec   :  { %1795 = vmatmul.mubr.msk.bf16.vlgmr.msra.gmra.mxu1 %vm936_vm13, %v69_v14 }
 0xeac   :  { %v1717_v9 = vpop.f32.mrf.mxu1 }
 0xead   :  { %v1718_v12 = vadd.f32 %v1717_v9, %v1678_v39 }
 0xeae   :  { %v1719_v13 = vpop.f32.mrf.mxu1 }
 0xeaf   :  { %v1724_v31 = vadd.f32 %v1718_v12, %v2587_v46  ;;  %v1720_v48 = vadd.f32 %v1719_v13, %v1678_v39 }
 0xeb0   :  { %v1721_v43 = vpop.f32.mrf.mxu1 }
 0xeb1   :  { %1726 = vst [vmem:[#allocation7] sm:$0xff] %v1724_v31  ;;  %v1725_v18 = vadd.f32 %v1720_v48, %v2590_v45 }
 0xeb2   :  { %v1722_v51 = vpop.f32.mrf.mxu1 }
 0xeb3   :  { %1727 = vst [vmem:[#allocation7 + $0x8] sm:$0xff] %v1725_v18 }
 0xeb4   :  { %2148 = shalt.err (!%p2145_p0)
}
 0xeb5   :  { %1737 = dma.vmem_to_hbm [thread:$0]  %s1735_s25, 256, %s2814_s6, [#allocation4]  }
 0xeb6   :  { %2161 = dma.done.wait [#allocation4], 256  }
 0xeb7   :  { %2162 = vsyncadd [#allocation4], 4294967040 }
 0xeb8   :  { %1741 = vsyncpa [#allocation3], 1 }
 0xeb9   :  { %1742 = vsyncpa [#allocation6], 1 }
 0xeba   :  { %1743 = vsyncpa [#allocation4], 1 }

</bundles_post_ra>
